<compile_context>
chip_gen: v7x
topology: tpu7x:2x2x1
jax: 0.10.0
libtpu: 0.0.40
codegen_flags: <defaults>
</compile_context>

<pallas_src>
import jax
import jax.numpy as jnp
from jax.experimental import pallas as pl
from jax.experimental.pallas import tpu as pltpu  # noqa: F401  (TPU backend)

# ----------------------------- model config (small) -------------------------
VOCAB = 100        # vocab_size
MAX_POS = 32       # max_position_embeddings
D = 64             # hidden dim
H = 2              # attention heads
DH = D // H        # head dim
FFN = 128          # feed-forward inner dim
N_LAYERS = 2       # transformer layers
NUM_LABELS = 3     # num_classes
B = 2              # batch
S = 8              # sequence length
EPS = 1e-12        # DistilBERT LayerNorm eps
NEG_BIG = 1e30     # additive attention-mask magnitude


# ----------------------------- kernel helpers --------------------------------
def _layernorm(x, gamma, beta):
    mu = jnp.mean(x, axis=-1, keepdims=True)
    var = jnp.mean((x - mu) ** 2, axis=-1, keepdims=True)
    return (x - mu) * jax.lax.rsqrt(var + EPS) * gamma + beta


# ----------------------------- fused whole-model kernel -----------------------
def _bert_kernel(emb_ref, addmask_ref, onehot_ref,
                 emb_g_ref, emb_b_ref,
                 wqkv_ref, bqkv_ref, wo_ref, bo_ref, g1_ref, be1_ref,
                 w1_ref, b1_ref, w2_ref, b2_ref, g2_ref, be2_ref,
                 wp_ref, bp_ref, wc_ref, bc_ref,
                 logits_ref, loss_ref):
    # embeddings + LayerNorm, hidden state kept lane-dense as (B*S, D)
    x = _layernorm(emb_ref[...].reshape(B * S, D), emb_g_ref[...], emb_b_ref[...])
    add_mask = addmask_ref[...]                       # (B, 1, S) additive mask
    scale = 1.0 / jnp.sqrt(jnp.float32(DH))

    for l in range(N_LAYERS):                         # static unroll, weights in VMEM
        # ---- fused QKV projection: one MXU pass, 192 output lanes ----------
        wqkv = wqkv_ref[l]                            # (D, 3D)
        bqkv = bqkv_ref[l]                            # (1, 3D)
        qkv = jnp.dot(x, wqkv, preferred_element_type=jnp.float32) + bqkv

        wo_l = wo_ref[l]                              # (D, D)
        bo_l = bo_ref[l]                              # (1, D)
        attn_out = jnp.zeros((B * S, D), jnp.float32)

        # TODO(synk): heads stay a static H=2 unrolled loop; 4-D multi-batch-dim
        # dot_general / major transposes are not reliably lowerable in Pallas
        # TPU, so a single batched-head einsum is not used.  The concatenate is
        # removed by projecting each head's context with its W_O row-block and
        # accumulating.
        for h in range(H):
            qh = qkv[:, 0 * D + h * DH:0 * D + (h + 1) * DH].reshape(B, S, DH)
            kh = qkv[:, 1 * D + h * DH:1 * D + (h + 1) * DH].reshape(B, S, DH)
            vh = qkv[:, 2 * D + h * DH:2 * D + (h + 1) * DH].reshape(B, S, DH)

            scores = jnp.einsum('bqd,bkd->bqk', qh, kh,
                                preferred_element_type=jnp.float32) * scale
            scores = scores + add_mask                # additive mask, no select
            scores = scores - jnp.max(scores, axis=-1, keepdims=True)
            p = jnp.exp(scores)
            p = p * pl.reciprocal(jnp.sum(p, axis=-1, keepdims=True), approx=True)

            ctx = jnp.einsum('bqk,bkd->bqd', p, vh,
                             preferred_element_type=jnp.float32)
            attn_out = attn_out + jnp.dot(ctx.reshape(B * S, DH),
                                          wo_l[h * DH:(h + 1) * DH, :],
                                          preferred_element_type=jnp.float32)
        attn_out = attn_out + bo_l

        # ---- residual + LayerNorm -------------------------------------------
        x = _layernorm(x + attn_out, g1_ref[l], be1_ref[l])

        # ---- FFN --------------------------------------------------------------
        h1 = jnp.dot(x, w1_ref[l], preferred_element_type=jnp.float32) + b1_ref[l]
        # TODO(synk): DistilBERT uses exact erf-GELU; tanh approximation here.
        h1 = jax.nn.gelu(h1, approximate=True)
        h2 = jnp.dot(h1, w2_ref[l], preferred_element_type=jnp.float32) + b2_ref[l]
        x = _layernorm(x + h2, g2_ref[l], be2_ref[l])

    # ---- classification head on [CLS] token ---------------------------------
    pooled = x.reshape(B, S, D)[:, 0, :]              # (B, D)
    hcls = jnp.dot(pooled, wp_ref[...], preferred_element_type=jnp.float32) + bp_ref[...]
    hcls = jnp.maximum(hcls, 0.0)                     # ReLU
    logits = jnp.dot(hcls, wc_ref[...], preferred_element_type=jnp.float32) + bc_ref[...]
    logits_ref[...] = logits

    # mean softmax cross-entropy (matches torch.nn.CrossEntropyLoss default)
    m = jnp.max(logits, axis=-1, keepdims=True)
    z = logits - m
    lse = jnp.log(jnp.sum(jnp.exp(z), axis=-1, keepdims=True))
    logp = z - lse
    loss = -jnp.sum(onehot_ref[...] * logp, keepdims=True) / jnp.float32(B)
    loss_ref[...] = loss.reshape(1, 1)


# ----------------------------- parameters ------------------------------------
def init_params(key):
    keys = iter(jax.random.split(key, 16))

    def w(shape):
        return jax.random.normal(next(keys), shape, jnp.float32) * 0.02

    return {
        'word_emb': w((VOCAB, D)),
        'pos_emb': w((MAX_POS, D)),
        'emb_g': jnp.ones((1, D), jnp.float32),
        'emb_b': jnp.zeros((1, D), jnp.float32),
        # per-layer weights stacked on a leading layer axis; QKV fused per layer
        'wqkv': w((N_LAYERS, D, 3 * D)),
        'bqkv': jnp.zeros((N_LAYERS, 1, 3 * D), jnp.float32),
        'wo': w((N_LAYERS, D, D)),
        'bo': jnp.zeros((N_LAYERS, 1, D), jnp.float32),
        'g1': jnp.ones((N_LAYERS, 1, D), jnp.float32),
        'be1': jnp.zeros((N_LAYERS, 1, D), jnp.float32),
        'w1': w((N_LAYERS, D, FFN)),
        'b1': jnp.zeros((N_LAYERS, 1, FFN), jnp.float32),
        'w2': w((N_LAYERS, FFN, D)),
        'b2': jnp.zeros((N_LAYERS, 1, D), jnp.float32),
        'g2': jnp.ones((N_LAYERS, 1, D), jnp.float32),
        'be2': jnp.zeros((N_LAYERS, 1, D), jnp.float32),
        'wp': w((D, D)),
        'bp': jnp.zeros((1, D), jnp.float32),
        'wc': w((D, NUM_LABELS)),
        'bc': jnp.zeros((1, NUM_LABELS), jnp.float32),
    }


# ----------------------------- forward (matches Bert.forward) ----------------
@jax.jit
def bert_forward(params, input_ids, attention_mask, labels):
    """Returns (loss, logits) like DistilBertForSequenceClassification."""
    # embeddings (gather is glue)
    pos_ids = jnp.arange(S, dtype=jnp.int32)
    emb = params['word_emb'][input_ids] + params['pos_emb'][pos_ids][None, :, :]

    # additive attention mask: 0 where attended, -1e30 where masked
    add_mask = ((attention_mask.astype(jnp.float32) - 1.0) * NEG_BIG).reshape(B, 1, S)
    onehot = jax.nn.one_hot(labels, NUM_LABELS, dtype=jnp.float32)

    logits, loss = pl.pallas_call(
        _bert_kernel,
        out_shape=(jax.ShapeDtypeStruct((B, NUM_LABELS), jnp.float32),
                   jax.ShapeDtypeStruct((1, 1), jnp.float32)),
    )(emb, add_mask, onehot,
      params['emb_g'], params['emb_b'],
      params['wqkv'], params['bqkv'], params['wo'], params['bo'],
      params['g1'], params['be1'],
      params['w1'], params['b1'], params['w2'], params['b2'],
      params['g2'], params['be2'],
      params['wp'], params['bp'], params['wc'], params['bc'])
    return loss[0, 0], logits


# ----------------------------- main -------------------------------------------
if __name__ == "__main__":
    key = jax.random.PRNGKey(0)
    pkey, ikey = jax.random.split(key)

    params = init_params(pkey)
    input_ids = jax.random.randint(ikey, (B, S), 0, VOCAB, dtype=jnp.int32)
    attention_mask = jnp.ones((B, S), jnp.float32).at[1, 6:].set(0.0)
    labels = jnp.array([0, 2], dtype=jnp.int32)

    loss, logits = bert_forward(params, input_ids, attention_mask, labels)
    jax.block_until_ready((loss, logits))
    print("KERNEL_OK")
</pallas_src>

<mosaic_0001>
module attributes {stable_mosaic.version = 11 : i64} {
  func.func @_bert_kernel(%arg0: memref<2x8x64xf32, #tpu.memory_space<vmem>>, %arg1: memref<2x1x8xf32, #tpu.memory_space<vmem>>, %arg2: memref<2x3xf32, #tpu.memory_space<vmem>>, %arg3: memref<1x64xf32, #tpu.memory_space<vmem>>, %arg4: memref<1x64xf32, #tpu.memory_space<vmem>>, %arg5: memref<2x64x192xf32, #tpu.memory_space<vmem>>, %arg6: memref<2x1x192xf32, #tpu.memory_space<vmem>>, %arg7: memref<2x64x64xf32, #tpu.memory_space<vmem>>, %arg8: memref<2x1x64xf32, #tpu.memory_space<vmem>>, %arg9: memref<2x1x64xf32, #tpu.memory_space<vmem>>, %arg10: memref<2x1x64xf32, #tpu.memory_space<vmem>>, %arg11: memref<2x64x128xf32, #tpu.memory_space<vmem>>, %arg12: memref<2x1x128xf32, #tpu.memory_space<vmem>>, %arg13: memref<2x128x64xf32, #tpu.memory_space<vmem>>, %arg14: memref<2x1x64xf32, #tpu.memory_space<vmem>>, %arg15: memref<2x1x64xf32, #tpu.memory_space<vmem>>, %arg16: memref<2x1x64xf32, #tpu.memory_space<vmem>>, %arg17: memref<64x64xf32, #tpu.memory_space<vmem>>, %arg18: memref<1x64xf32, #tpu.memory_space<vmem>>, %arg19: memref<64x3xf32, #tpu.memory_space<vmem>>, %arg20: memref<1x3xf32, #tpu.memory_space<vmem>>, %arg21: memref<2x3xf32, #tpu.memory_space<vmem>>, %arg22: memref<1x1xf32, #tpu.memory_space<vmem>>) attributes {dimension_semantics = [], scalar_prefetch = 0 : i64, scratch_operands = 0 : i64, tpu.core_type = #tpu.core_type<tc>} {
    %c0 = arith.constant 0 : index
    %c0_0 = arith.constant 0 : index
    %c0_1 = arith.constant 0 : index
    %0 = vector.load %arg0[%c0, %c0_0, %c0_1] : memref<2x8x64xf32, #tpu.memory_space<vmem>>, vector<2x8x64xf32>
    %1 = vector.shape_cast %0 : vector<2x8x64xf32> to vector<16x64xf32>
    %c0_2 = arith.constant 0 : index
    %c0_3 = arith.constant 0 : index
    %2 = vector.load %arg3[%c0_2, %c0_3] : memref<1x64xf32, #tpu.memory_space<vmem>>, vector<1x64xf32>
    %c0_4 = arith.constant 0 : index
    %c0_5 = arith.constant 0 : index
    %3 = vector.load %arg4[%c0_4, %c0_5] : memref<1x64xf32, #tpu.memory_space<vmem>>, vector<1x64xf32>
    %cst = arith.constant dense<0.000000e+00> : vector<16xf32>
    %4 = vector.multi_reduction <add>, %1, %cst [1] : vector<16x64xf32> to vector<16xf32>
    %5 = vector.shape_cast %4 : vector<16xf32> to vector<16x1xf32>
    %cst_6 = arith.constant 6.400000e+01 : f32
    %6 = vector.broadcast %cst_6 : f32 to vector<16x1xf32>
    %7 = arith.divf %5, %6 : vector<16x1xf32>
    %8 = vector.broadcast %7 : vector<16x1xf32> to vector<16x64xf32>
    %9 = arith.subf %1, %8 : vector<16x64xf32>
    %10 = arith.mulf %9, %9 : vector<16x64xf32>
    %cst_7 = arith.constant dense<0.000000e+00> : vector<16xf32>
    %11 = vector.multi_reduction <add>, %10, %cst_7 [1] : vector<16x64xf32> to vector<16xf32>
    %12 = vector.shape_cast %11 : vector<16xf32> to vector<16x1xf32>
    %cst_8 = arith.constant 6.400000e+01 : f32
    %13 = vector.broadcast %cst_8 : f32 to vector<16x1xf32>
    %14 = arith.divf %12, %13 : vector<16x1xf32>
    %15 = vector.broadcast %7 : vector<16x1xf32> to vector<16x64xf32>
    %16 = arith.subf %1, %15 : vector<16x64xf32>
    %cst_9 = arith.constant 9.99999996E-13 : f32
    %17 = vector.broadcast %cst_9 : f32 to vector<16x1xf32>
    %18 = arith.addf %14, %17 : vector<16x1xf32>
    %19 = math.rsqrt %18 : vector<16x1xf32>
    %20 = vector.broadcast %19 : vector<16x1xf32> to vector<16x64xf32>
    %21 = arith.mulf %16, %20 : vector<16x64xf32>
    %22 = vector.broadcast %2 : vector<1x64xf32> to vector<16x64xf32>
    %23 = arith.mulf %21, %22 : vector<16x64xf32>
    %24 = vector.broadcast %3 : vector<1x64xf32> to vector<16x64xf32>
    %25 = arith.addf %23, %24 : vector<16x64xf32>
    %c0_10 = arith.constant 0 : index
    %c0_11 = arith.constant 0 : index
    %c0_12 = arith.constant 0 : index
    %26 = vector.load %arg1[%c0_10, %c0_11, %c0_12] : memref<2x1x8xf32, #tpu.memory_space<vmem>>, vector<2x1x8xf32>
    %cst_13 = arith.constant 3.200000e+01 : f32
    %27 = math.sqrt %cst_13 : f32
    %cst_14 = arith.constant 1.000000e+00 : f32
    %28 = arith.divf %cst_14, %27 : f32
    %c0_15 = arith.constant 0 : index
    %c0_16 = arith.constant 0 : index
    %c0_17 = arith.constant 0 : index
    %29 = vector.load %arg5[%c0_15, %c0_16, %c0_17] : memref<2x64x192xf32, #tpu.memory_space<vmem>>, vector<1x64x192xf32>
    %30 = vector.shape_cast %29 : vector<1x64x192xf32> to vector<64x192xf32>
    %c0_18 = arith.constant 0 : index
    %c0_19 = arith.constant 0 : index
    %c0_20 = arith.constant 0 : index
    %31 = vector.load %arg6[%c0_18, %c0_19, %c0_20] : memref<2x1x192xf32, #tpu.memory_space<vmem>>, vector<1x1x192xf32>
    %32 = vector.shape_cast %31 : vector<1x1x192xf32> to vector<1x192xf32>
    %cst_21 = arith.constant dense<0.000000e+00> : vector<16x192xf32>
    %33 = tpu.matmul %25, %30, %cst_21 {dimension_numbers = #tpu.dot_dimension_numbers<[1], [0], [0], [1], [0, 0, 1, 1], [], []>} : vector<16x64xf32>, vector<64x192xf32>, vector<16x192xf32> -> vector<16x192xf32>
    %34 = vector.broadcast %32 : vector<1x192xf32> to vector<16x192xf32>
    %35 = arith.addf %33, %34 : vector<16x192xf32>
    %c0_22 = arith.constant 0 : index
    %c0_23 = arith.constant 0 : index
    %c0_24 = arith.constant 0 : index
    %36 = vector.load %arg7[%c0_22, %c0_23, %c0_24] : memref<2x64x64xf32, #tpu.memory_space<vmem>>, vector<1x64x64xf32>
    %37 = vector.shape_cast %36 : vector<1x64x64xf32> to vector<64x64xf32>
    %c0_25 = arith.constant 0 : index
    %c0_26 = arith.constant 0 : index
    %c0_27 = arith.constant 0 : index
    %38 = vector.load %arg8[%c0_25, %c0_26, %c0_27] : memref<2x1x64xf32, #tpu.memory_space<vmem>>, vector<1x1x64xf32>
    %39 = vector.shape_cast %38 : vector<1x1x64xf32> to vector<1x64xf32>
    %cst_28 = arith.constant 0.000000e+00 : f32
    %40 = vector.broadcast %cst_28 : f32 to vector<16x64xf32>
    %41 = vector.extract_strided_slice %35 {offsets = [0, 0], sizes = [16, 32], strides = [1, 1]} : vector<16x192xf32> to vector<16x32xf32>
    %42 = vector.shape_cast %41 : vector<16x32xf32> to vector<2x8x32xf32>
    %43 = vector.extract_strided_slice %35 {offsets = [0, 64], sizes = [16, 32], strides = [1, 1]} : vector<16x192xf32> to vector<16x32xf32>
    %44 = vector.shape_cast %43 : vector<16x32xf32> to vector<2x8x32xf32>
    %45 = vector.extract_strided_slice %35 {offsets = [0, 128], sizes = [16, 32], strides = [1, 1]} : vector<16x192xf32> to vector<16x32xf32>
    %46 = vector.shape_cast %45 : vector<16x32xf32> to vector<2x8x32xf32>
    "tpu.trace_start"() <{level = 10 : i32, message = "bqd,bkd->bqk"}> : () -> ()
    %cst_29 = arith.constant dense<0.000000e+00> : vector<2x8x8xf32>
    %47 = tpu.matmul %42, %44, %cst_29 {dimension_numbers = #tpu.dot_dimension_numbers<[2], [2], [1], [1], [0, 0, 0, 1, 1, 1], [0], [0]>} : vector<2x8x32xf32>, vector<2x8x32xf32>, vector<2x8x8xf32> -> vector<2x8x8xf32>
    "tpu.trace_stop"() : () -> ()
    %48 = vector.broadcast %28 : f32 to vector<2x8x8xf32>
    %49 = arith.mulf %47, %48 : vector<2x8x8xf32>
    %50 = vector.broadcast %26 : vector<2x1x8xf32> to vector<2x8x8xf32>
    %51 = arith.addf %49, %50 : vector<2x8x8xf32>
    %cst_30 = arith.constant dense<0xFF800000> : vector<2x8xf32>
    %52 = vector.multi_reduction <maximumf>, %51, %cst_30 [2] : vector<2x8x8xf32> to vector<2x8xf32>
    %53 = vector.shape_cast %52 : vector<2x8xf32> to vector<2x8x1xf32>
    %54 = vector.broadcast %53 : vector<2x8x1xf32> to vector<2x8x8xf32>
    %55 = arith.subf %51, %54 : vector<2x8x8xf32>
    %56 = math.exp %55 : vector<2x8x8xf32>
    %cst_31 = arith.constant dense<0.000000e+00> : vector<2x8xf32>
    %57 = vector.multi_reduction <add>, %56, %cst_31 [2] : vector<2x8x8xf32> to vector<2x8xf32>
    %58 = vector.shape_cast %57 : vector<2x8xf32> to vector<2x8x1xf32>
    %59 = tpu.reciprocal %58 {approx = true} : vector<2x8x1xf32> -> vector<2x8x1xf32>
    %60 = vector.broadcast %59 : vector<2x8x1xf32> to vector<2x8x8xf32>
    %61 = arith.mulf %56, %60 : vector<2x8x8xf32>
    "tpu.trace_start"() <{level = 10 : i32, message = "bqk,bkd->bqd"}> : () -> ()
    %cst_32 = arith.constant dense<0.000000e+00> : vector<2x8x32xf32>
    %62 = tpu.matmul %61, %46, %cst_32 {dimension_numbers = #tpu.dot_dimension_numbers<[2], [1], [1], [2], [0, 0, 0, 1, 1, 2], [0], [0]>} : vector<2x8x8xf32>, vector<2x8x32xf32>, vector<2x8x32xf32> -> vector<2x8x32xf32>
    "tpu.trace_stop"() : () -> ()
    %63 = vector.shape_cast %62 : vector<2x8x32xf32> to vector<16x32xf32>
    %64 = vector.extract_strided_slice %37 {offsets = [0, 0], sizes = [32, 64], strides = [1, 1]} : vector<64x64xf32> to vector<32x64xf32>
    %cst_33 = arith.constant dense<0.000000e+00> : vector<16x64xf32>
    %65 = tpu.matmul %63, %64, %cst_33 {dimension_numbers = #tpu.dot_dimension_numbers<[1], [0], [0], [1], [0, 0, 1, 1], [], []>} : vector<16x32xf32>, vector<32x64xf32>, vector<16x64xf32> -> vector<16x64xf32>
    %66 = arith.addf %40, %65 : vector<16x64xf32>
    %67 = vector.extract_strided_slice %35 {offsets = [0, 32], sizes = [16, 32], strides = [1, 1]} : vector<16x192xf32> to vector<16x32xf32>
    %68 = vector.shape_cast %67 : vector<16x32xf32> to vector<2x8x32xf32>
    %69 = vector.extract_strided_slice %35 {offsets = [0, 96], sizes = [16, 32], strides = [1, 1]} : vector<16x192xf32> to vector<16x32xf32>
    %70 = vector.shape_cast %69 : vector<16x32xf32> to vector<2x8x32xf32>
    %71 = vector.extract_strided_slice %35 {offsets = [0, 160], sizes = [16, 32], strides = [1, 1]} : vector<16x192xf32> to vector<16x32xf32>
    %72 = vector.shape_cast %71 : vector<16x32xf32> to vector<2x8x32xf32>
    "tpu.trace_start"() <{level = 10 : i32, message = "bqd,bkd->bqk"}> : () -> ()
    %cst_34 = arith.constant dense<0.000000e+00> : vector<2x8x8xf32>
    %73 = tpu.matmul %68, %70, %cst_34 {dimension_numbers = #tpu.dot_dimension_numbers<[2], [2], [1], [1], [0, 0, 0, 1, 1, 1], [0], [0]>} : vector<2x8x32xf32>, vector<2x8x32xf32>, vector<2x8x8xf32> -> vector<2x8x8xf32>
    "tpu.trace_stop"() : () -> ()
    %74 = vector.broadcast %28 : f32 to vector<2x8x8xf32>
    %75 = arith.mulf %73, %74 : vector<2x8x8xf32>
    %76 = vector.broadcast %26 : vector<2x1x8xf32> to vector<2x8x8xf32>
    %77 = arith.addf %75, %76 : vector<2x8x8xf32>
    %cst_35 = arith.constant dense<0xFF800000> : vector<2x8xf32>
    %78 = vector.multi_reduction <maximumf>, %77, %cst_35 [2] : vector<2x8x8xf32> to vector<2x8xf32>
    %79 = vector.shape_cast %78 : vector<2x8xf32> to vector<2x8x1xf32>
    %80 = vector.broadcast %79 : vector<2x8x1xf32> to vector<2x8x8xf32>
    %81 = arith.subf %77, %80 : vector<2x8x8xf32>
    %82 = math.exp %81 : vector<2x8x8xf32>
    %cst_36 = arith.constant dense<0.000000e+00> : vector<2x8xf32>
    %83 = vector.multi_reduction <add>, %82, %cst_36 [2] : vector<2x8x8xf32> to vector<2x8xf32>
    %84 = vector.shape_cast %83 : vector<2x8xf32> to vector<2x8x1xf32>
    %85 = tpu.reciprocal %84 {approx = true} : vector<2x8x1xf32> -> vector<2x8x1xf32>
    %86 = vector.broadcast %85 : vector<2x8x1xf32> to vector<2x8x8xf32>
    %87 = arith.mulf %82, %86 : vector<2x8x8xf32>
    "tpu.trace_start"() <{level = 10 : i32, message = "bqk,bkd->bqd"}> : () -> ()
    %cst_37 = arith.constant dense<0.000000e+00> : vector<2x8x32xf32>
    %88 = tpu.matmul %87, %72, %cst_37 {dimension_numbers = #tpu.dot_dimension_numbers<[2], [1], [1], [2], [0, 0, 0, 1, 1, 2], [0], [0]>} : vector<2x8x8xf32>, vector<2x8x32xf32>, vector<2x8x32xf32> -> vector<2x8x32xf32>
    "tpu.trace_stop"() : () -> ()
    %89 = vector.shape_cast %88 : vector<2x8x32xf32> to vector<16x32xf32>
    %90 = vector.extract_strided_slice %37 {offsets = [32, 0], sizes = [32, 64], strides = [1, 1]} : vector<64x64xf32> to vector<32x64xf32>
    %cst_38 = arith.constant dense<0.000000e+00> : vector<16x64xf32>
    %91 = tpu.matmul %89, %90, %cst_38 {dimension_numbers = #tpu.dot_dimension_numbers<[1], [0], [0], [1], [0, 0, 1, 1], [], []>} : vector<16x32xf32>, vector<32x64xf32>, vector<16x64xf32> -> vector<16x64xf32>
    %92 = arith.addf %66, %91 : vector<16x64xf32>
    %93 = vector.broadcast %39 : vector<1x64xf32> to vector<16x64xf32>
    %94 = arith.addf %92, %93 : vector<16x64xf32>
    %95 = arith.addf %25, %94 : vector<16x64xf32>
    %c0_39 = arith.constant 0 : index
    %c0_40 = arith.constant 0 : index
    %c0_41 = arith.constant 0 : index
    %96 = vector.load %arg9[%c0_39, %c0_40, %c0_41] : memref<2x1x64xf32, #tpu.memory_space<vmem>>, vector<1x1x64xf32>
    %97 = vector.shape_cast %96 : vector<1x1x64xf32> to vector<1x64xf32>
    %c0_42 = arith.constant 0 : index
    %c0_43 = arith.constant 0 : index
    %c0_44 = arith.constant 0 : index
    %98 = vector.load %arg10[%c0_42, %c0_43, %c0_44] : memref<2x1x64xf32, #tpu.memory_space<vmem>>, vector<1x1x64xf32>
    %99 = vector.shape_cast %98 : vector<1x1x64xf32> to vector<1x64xf32>
    %cst_45 = arith.constant dense<0.000000e+00> : vector<16xf32>
    %100 = vector.multi_reduction <add>, %95, %cst_45 [1] : vector<16x64xf32> to vector<16xf32>
    %101 = vector.shape_cast %100 : vector<16xf32> to vector<16x1xf32>
    %cst_46 = arith.constant 6.400000e+01 : f32
    %102 = vector.broadcast %cst_46 : f32 to vector<16x1xf32>
    %103 = arith.divf %101, %102 : vector<16x1xf32>
    %104 = vector.broadcast %103 : vector<16x1xf32> to vector<16x64xf32>
    %105 = arith.subf %95, %104 : vector<16x64xf32>
    %106 = arith.mulf %105, %105 : vector<16x64xf32>
    %cst_47 = arith.constant dense<0.000000e+00> : vector<16xf32>
    %107 = vector.multi_reduction <add>, %106, %cst_47 [1] : vector<16x64xf32> to vector<16xf32>
    %108 = vector.shape_cast %107 : vector<16xf32> to vector<16x1xf32>
    %cst_48 = arith.constant 6.400000e+01 : f32
    %109 = vector.broadcast %cst_48 : f32 to vector<16x1xf32>
    %110 = arith.divf %108, %109 : vector<16x1xf32>
    %111 = vector.broadcast %103 : vector<16x1xf32> to vector<16x64xf32>
    %112 = arith.subf %95, %111 : vector<16x64xf32>
    %cst_49 = arith.constant 9.99999996E-13 : f32
    %113 = vector.broadcast %cst_49 : f32 to vector<16x1xf32>
    %114 = arith.addf %110, %113 : vector<16x1xf32>
    %115 = math.rsqrt %114 : vector<16x1xf32>
    %116 = vector.broadcast %115 : vector<16x1xf32> to vector<16x64xf32>
    %117 = arith.mulf %112, %116 : vector<16x64xf32>
    %118 = vector.broadcast %97 : vector<1x64xf32> to vector<16x64xf32>
    %119 = arith.mulf %117, %118 : vector<16x64xf32>
    %120 = vector.broadcast %99 : vector<1x64xf32> to vector<16x64xf32>
    %121 = arith.addf %119, %120 : vector<16x64xf32>
    %c0_50 = arith.constant 0 : index
    %c0_51 = arith.constant 0 : index
    %c0_52 = arith.constant 0 : index
    %122 = vector.load %arg11[%c0_50, %c0_51, %c0_52] : memref<2x64x128xf32, #tpu.memory_space<vmem>>, vector<1x64x128xf32>
    %123 = vector.shape_cast %122 : vector<1x64x128xf32> to vector<64x128xf32>
    %cst_53 = arith.constant dense<0.000000e+00> : vector<16x128xf32>
    %124 = tpu.matmul %121, %123, %cst_53 {dimension_numbers = #tpu.dot_dimension_numbers<[1], [0], [0], [1], [0, 0, 1, 1], [], []>} : vector<16x64xf32>, vector<64x128xf32>, vector<16x128xf32> -> vector<16x128xf32>
    %c0_54 = arith.constant 0 : index
    %c0_55 = arith.constant 0 : index
    %c0_56 = arith.constant 0 : index
    %125 = vector.load %arg12[%c0_54, %c0_55, %c0_56] : memref<2x1x128xf32, #tpu.memory_space<vmem>>, vector<1x1x128xf32>
    %126 = vector.shape_cast %125 : vector<1x1x128xf32> to vector<1x128xf32>
    %127 = vector.broadcast %126 : vector<1x128xf32> to vector<16x128xf32>
    %128 = arith.addf %124, %127 : vector<16x128xf32>
    %129 = arith.mulf %128, %128 : vector<16x128xf32>
    %130 = arith.mulf %128, %129 : vector<16x128xf32>
    %cst_57 = arith.constant 4.471500e-02 : f32
    %131 = vector.broadcast %cst_57 : f32 to vector<16x128xf32>
    %132 = arith.mulf %131, %130 : vector<16x128xf32>
    %133 = arith.addf %128, %132 : vector<16x128xf32>
    %cst_58 = arith.constant 0.797884583 : f32
    %134 = vector.broadcast %cst_58 : f32 to vector<16x128xf32>
    %135 = arith.mulf %134, %133 : vector<16x128xf32>
    %136 = math.tanh %135 : vector<16x128xf32>
    %cst_59 = arith.constant 1.000000e+00 : f32
    %137 = vector.broadcast %cst_59 : f32 to vector<16x128xf32>
    %138 = arith.addf %137, %136 : vector<16x128xf32>
    %cst_60 = arith.constant 5.000000e-01 : f32
    %139 = vector.broadcast %cst_60 : f32 to vector<16x128xf32>
    %140 = arith.mulf %139, %138 : vector<16x128xf32>
    %141 = arith.mulf %128, %140 : vector<16x128xf32>
    %c0_61 = arith.constant 0 : index
    %c0_62 = arith.constant 0 : index
    %c0_63 = arith.constant 0 : index
    %142 = vector.load %arg13[%c0_61, %c0_62, %c0_63] : memref<2x128x64xf32, #tpu.memory_space<vmem>>, vector<1x128x64xf32>
    %143 = vector.shape_cast %142 : vector<1x128x64xf32> to vector<128x64xf32>
    %cst_64 = arith.constant dense<0.000000e+00> : vector<16x64xf32>
    %144 = tpu.matmul %141, %143, %cst_64 {dimension_numbers = #tpu.dot_dimension_numbers<[1], [0], [0], [1], [0, 0, 1, 1], [], []>} : vector<16x128xf32>, vector<128x64xf32>, vector<16x64xf32> -> vector<16x64xf32>
    %c0_65 = arith.constant 0 : index
    %c0_66 = arith.constant 0 : index
    %c0_67 = arith.constant 0 : index
    %145 = vector.load %arg14[%c0_65, %c0_66, %c0_67] : memref<2x1x64xf32, #tpu.memory_space<vmem>>, vector<1x1x64xf32>
    %146 = vector.shape_cast %145 : vector<1x1x64xf32> to vector<1x64xf32>
    %147 = vector.broadcast %146 : vector<1x64xf32> to vector<16x64xf32>
    %148 = arith.addf %144, %147 : vector<16x64xf32>
    %149 = arith.addf %121, %148 : vector<16x64xf32>
    %c0_68 = arith.constant 0 : index
    %c0_69 = arith.constant 0 : index
    %c0_70 = arith.constant 0 : index
    %150 = vector.load %arg15[%c0_68, %c0_69, %c0_70] : memref<2x1x64xf32, #tpu.memory_space<vmem>>, vector<1x1x64xf32>
    %151 = vector.shape_cast %150 : vector<1x1x64xf32> to vector<1x64xf32>
    %c0_71 = arith.constant 0 : index
    %c0_72 = arith.constant 0 : index
    %c0_73 = arith.constant 0 : index
    %152 = vector.load %arg16[%c0_71, %c0_72, %c0_73] : memref<2x1x64xf32, #tpu.memory_space<vmem>>, vector<1x1x64xf32>
    %153 = vector.shape_cast %152 : vector<1x1x64xf32> to vector<1x64xf32>
    %cst_74 = arith.constant dense<0.000000e+00> : vector<16xf32>
    %154 = vector.multi_reduction <add>, %149, %cst_74 [1] : vector<16x64xf32> to vector<16xf32>
    %155 = vector.shape_cast %154 : vector<16xf32> to vector<16x1xf32>
    %cst_75 = arith.constant 6.400000e+01 : f32
    %156 = vector.broadcast %cst_75 : f32 to vector<16x1xf32>
    %157 = arith.divf %155, %156 : vector<16x1xf32>
    %158 = vector.broadcast %157 : vector<16x1xf32> to vector<16x64xf32>
    %159 = arith.subf %149, %158 : vector<16x64xf32>
    %160 = arith.mulf %159, %159 : vector<16x64xf32>
    %cst_76 = arith.constant dense<0.000000e+00> : vector<16xf32>
    %161 = vector.multi_reduction <add>, %160, %cst_76 [1] : vector<16x64xf32> to vector<16xf32>
    %162 = vector.shape_cast %161 : vector<16xf32> to vector<16x1xf32>
    %cst_77 = arith.constant 6.400000e+01 : f32
    %163 = vector.broadcast %cst_77 : f32 to vector<16x1xf32>
    %164 = arith.divf %162, %163 : vector<16x1xf32>
    %165 = vector.broadcast %157 : vector<16x1xf32> to vector<16x64xf32>
    %166 = arith.subf %149, %165 : vector<16x64xf32>
    %cst_78 = arith.constant 9.99999996E-13 : f32
    %167 = vector.broadcast %cst_78 : f32 to vector<16x1xf32>
    %168 = arith.addf %164, %167 : vector<16x1xf32>
    %169 = math.rsqrt %168 : vector<16x1xf32>
    %170 = vector.broadcast %169 : vector<16x1xf32> to vector<16x64xf32>
    %171 = arith.mulf %166, %170 : vector<16x64xf32>
    %172 = vector.broadcast %151 : vector<1x64xf32> to vector<16x64xf32>
    %173 = arith.mulf %171, %172 : vector<16x64xf32>
    %174 = vector.broadcast %153 : vector<1x64xf32> to vector<16x64xf32>
    %175 = arith.addf %173, %174 : vector<16x64xf32>
    %c1 = arith.constant 1 : index
    %c0_79 = arith.constant 0 : index
    %c0_80 = arith.constant 0 : index
    %176 = vector.load %arg5[%c1, %c0_79, %c0_80] : memref<2x64x192xf32, #tpu.memory_space<vmem>>, vector<1x64x192xf32>
    %177 = vector.shape_cast %176 : vector<1x64x192xf32> to vector<64x192xf32>
    %c1_81 = arith.constant 1 : index
    %c0_82 = arith.constant 0 : index
    %c0_83 = arith.constant 0 : index
    %178 = vector.load %arg6[%c1_81, %c0_82, %c0_83] : memref<2x1x192xf32, #tpu.memory_space<vmem>>, vector<1x1x192xf32>
    %179 = vector.shape_cast %178 : vector<1x1x192xf32> to vector<1x192xf32>
    %cst_84 = arith.constant dense<0.000000e+00> : vector<16x192xf32>
    %180 = tpu.matmul %175, %177, %cst_84 {dimension_numbers = #tpu.dot_dimension_numbers<[1], [0], [0], [1], [0, 0, 1, 1], [], []>} : vector<16x64xf32>, vector<64x192xf32>, vector<16x192xf32> -> vector<16x192xf32>
    %181 = vector.broadcast %179 : vector<1x192xf32> to vector<16x192xf32>
    %182 = arith.addf %180, %181 : vector<16x192xf32>
    %c1_85 = arith.constant 1 : index
    %c0_86 = arith.constant 0 : index
    %c0_87 = arith.constant 0 : index
    %183 = vector.load %arg7[%c1_85, %c0_86, %c0_87] : memref<2x64x64xf32, #tpu.memory_space<vmem>>, vector<1x64x64xf32>
    %184 = vector.shape_cast %183 : vector<1x64x64xf32> to vector<64x64xf32>
    %c1_88 = arith.constant 1 : index
    %c0_89 = arith.constant 0 : index
    %c0_90 = arith.constant 0 : index
    %185 = vector.load %arg8[%c1_88, %c0_89, %c0_90] : memref<2x1x64xf32, #tpu.memory_space<vmem>>, vector<1x1x64xf32>
    %186 = vector.shape_cast %185 : vector<1x1x64xf32> to vector<1x64xf32>
    %cst_91 = arith.constant 0.000000e+00 : f32
    %187 = vector.broadcast %cst_91 : f32 to vector<16x64xf32>
    %188 = vector.extract_strided_slice %182 {offsets = [0, 0], sizes = [16, 32], strides = [1, 1]} : vector<16x192xf32> to vector<16x32xf32>
    %189 = vector.shape_cast %188 : vector<16x32xf32> to vector<2x8x32xf32>
    %190 = vector.extract_strided_slice %182 {offsets = [0, 64], sizes = [16, 32], strides = [1, 1]} : vector<16x192xf32> to vector<16x32xf32>
    %191 = vector.shape_cast %190 : vector<16x32xf32> to vector<2x8x32xf32>
    %192 = vector.extract_strided_slice %182 {offsets = [0, 128], sizes = [16, 32], strides = [1, 1]} : vector<16x192xf32> to vector<16x32xf32>
    %193 = vector.shape_cast %192 : vector<16x32xf32> to vector<2x8x32xf32>
    "tpu.trace_start"() <{level = 10 : i32, message = "bqd,bkd->bqk"}> : () -> ()
    %cst_92 = arith.constant dense<0.000000e+00> : vector<2x8x8xf32>
    %194 = tpu.matmul %189, %191, %cst_92 {dimension_numbers = #tpu.dot_dimension_numbers<[2], [2], [1], [1], [0, 0, 0, 1, 1, 1], [0], [0]>} : vector<2x8x32xf32>, vector<2x8x32xf32>, vector<2x8x8xf32> -> vector<2x8x8xf32>
    "tpu.trace_stop"() : () -> ()
    %195 = vector.broadcast %28 : f32 to vector<2x8x8xf32>
    %196 = arith.mulf %194, %195 : vector<2x8x8xf32>
    %197 = vector.broadcast %26 : vector<2x1x8xf32> to vector<2x8x8xf32>
    %198 = arith.addf %196, %197 : vector<2x8x8xf32>
    %cst_93 = arith.constant dense<0xFF800000> : vector<2x8xf32>
    %199 = vector.multi_reduction <maximumf>, %198, %cst_93 [2] : vector<2x8x8xf32> to vector<2x8xf32>
    %200 = vector.shape_cast %199 : vector<2x8xf32> to vector<2x8x1xf32>
    %201 = vector.broadcast %200 : vector<2x8x1xf32> to vector<2x8x8xf32>
    %202 = arith.subf %198, %201 : vector<2x8x8xf32>
    %203 = math.exp %202 : vector<2x8x8xf32>
    %cst_94 = arith.constant dense<0.000000e+00> : vector<2x8xf32>
    %204 = vector.multi_reduction <add>, %203, %cst_94 [2] : vector<2x8x8xf32> to vector<2x8xf32>
    %205 = vector.shape_cast %204 : vector<2x8xf32> to vector<2x8x1xf32>
    %206 = tpu.reciprocal %205 {approx = true} : vector<2x8x1xf32> -> vector<2x8x1xf32>
    %207 = vector.broadcast %206 : vector<2x8x1xf32> to vector<2x8x8xf32>
    %208 = arith.mulf %203, %207 : vector<2x8x8xf32>
    "tpu.trace_start"() <{level = 10 : i32, message = "bqk,bkd->bqd"}> : () -> ()
    %cst_95 = arith.constant dense<0.000000e+00> : vector<2x8x32xf32>
    %209 = tpu.matmul %208, %193, %cst_95 {dimension_numbers = #tpu.dot_dimension_numbers<[2], [1], [1], [2], [0, 0, 0, 1, 1, 2], [0], [0]>} : vector<2x8x8xf32>, vector<2x8x32xf32>, vector<2x8x32xf32> -> vector<2x8x32xf32>
    "tpu.trace_stop"() : () -> ()
    %210 = vector.shape_cast %209 : vector<2x8x32xf32> to vector<16x32xf32>
    %211 = vector.extract_strided_slice %184 {offsets = [0, 0], sizes = [32, 64], strides = [1, 1]} : vector<64x64xf32> to vector<32x64xf32>
    %cst_96 = arith.constant dense<0.000000e+00> : vector<16x64xf32>
    %212 = tpu.matmul %210, %211, %cst_96 {dimension_numbers = #tpu.dot_dimension_numbers<[1], [0], [0], [1], [0, 0, 1, 1], [], []>} : vector<16x32xf32>, vector<32x64xf32>, vector<16x64xf32> -> vector<16x64xf32>
    %213 = arith.addf %187, %212 : vector<16x64xf32>
    %214 = vector.extract_strided_slice %182 {offsets = [0, 32], sizes = [16, 32], strides = [1, 1]} : vector<16x192xf32> to vector<16x32xf32>
    %215 = vector.shape_cast %214 : vector<16x32xf32> to vector<2x8x32xf32>
    %216 = vector.extract_strided_slice %182 {offsets = [0, 96], sizes = [16, 32], strides = [1, 1]} : vector<16x192xf32> to vector<16x32xf32>
    %217 = vector.shape_cast %216 : vector<16x32xf32> to vector<2x8x32xf32>
    %218 = vector.extract_strided_slice %182 {offsets = [0, 160], sizes = [16, 32], strides = [1, 1]} : vector<16x192xf32> to vector<16x32xf32>
    %219 = vector.shape_cast %218 : vector<16x32xf32> to vector<2x8x32xf32>
    "tpu.trace_start"() <{level = 10 : i32, message = "bqd,bkd->bqk"}> : () -> ()
    %cst_97 = arith.constant dense<0.000000e+00> : vector<2x8x8xf32>
    %220 = tpu.matmul %215, %217, %cst_97 {dimension_numbers = #tpu.dot_dimension_numbers<[2], [2], [1], [1], [0, 0, 0, 1, 1, 1], [0], [0]>} : vector<2x8x32xf32>, vector<2x8x32xf32>, vector<2x8x8xf32> -> vector<2x8x8xf32>
    "tpu.trace_stop"() : () -> ()
    %221 = vector.broadcast %28 : f32 to vector<2x8x8xf32>
    %222 = arith.mulf %220, %221 : vector<2x8x8xf32>
    %223 = vector.broadcast %26 : vector<2x1x8xf32> to vector<2x8x8xf32>
    %224 = arith.addf %222, %223 : vector<2x8x8xf32>
    %cst_98 = arith.constant dense<0xFF800000> : vector<2x8xf32>
    %225 = vector.multi_reduction <maximumf>, %224, %cst_98 [2] : vector<2x8x8xf32> to vector<2x8xf32>
    %226 = vector.shape_cast %225 : vector<2x8xf32> to vector<2x8x1xf32>
    %227 = vector.broadcast %226 : vector<2x8x1xf32> to vector<2x8x8xf32>
    %228 = arith.subf %224, %227 : vector<2x8x8xf32>
    %229 = math.exp %228 : vector<2x8x8xf32>
    %cst_99 = arith.constant dense<0.000000e+00> : vector<2x8xf32>
    %230 = vector.multi_reduction <add>, %229, %cst_99 [2] : vector<2x8x8xf32> to vector<2x8xf32>
    %231 = vector.shape_cast %230 : vector<2x8xf32> to vector<2x8x1xf32>
    %232 = tpu.reciprocal %231 {approx = true} : vector<2x8x1xf32> -> vector<2x8x1xf32>
    %233 = vector.broadcast %232 : vector<2x8x1xf32> to vector<2x8x8xf32>
    %234 = arith.mulf %229, %233 : vector<2x8x8xf32>
    "tpu.trace_start"() <{level = 10 : i32, message = "bqk,bkd->bqd"}> : () -> ()
    %cst_100 = arith.constant dense<0.000000e+00> : vector<2x8x32xf32>
    %235 = tpu.matmul %234, %219, %cst_100 {dimension_numbers = #tpu.dot_dimension_numbers<[2], [1], [1], [2], [0, 0, 0, 1, 1, 2], [0], [0]>} : vector<2x8x8xf32>, vector<2x8x32xf32>, vector<2x8x32xf32> -> vector<2x8x32xf32>
    "tpu.trace_stop"() : () -> ()
    %236 = vector.shape_cast %235 : vector<2x8x32xf32> to vector<16x32xf32>
    %237 = vector.extract_strided_slice %184 {offsets = [32, 0], sizes = [32, 64], strides = [1, 1]} : vector<64x64xf32> to vector<32x64xf32>
    %cst_101 = arith.constant dense<0.000000e+00> : vector<16x64xf32>
    %238 = tpu.matmul %236, %237, %cst_101 {dimension_numbers = #tpu.dot_dimension_numbers<[1], [0], [0], [1], [0, 0, 1, 1], [], []>} : vector<16x32xf32>, vector<32x64xf32>, vector<16x64xf32> -> vector<16x64xf32>
    %239 = arith.addf %213, %238 : vector<16x64xf32>
    %240 = vector.broadcast %186 : vector<1x64xf32> to vector<16x64xf32>
    %241 = arith.addf %239, %240 : vector<16x64xf32>
    %242 = arith.addf %175, %241 : vector<16x64xf32>
    %c1_102 = arith.constant 1 : index
    %c0_103 = arith.constant 0 : index
    %c0_104 = arith.constant 0 : index
    %243 = vector.load %arg9[%c1_102, %c0_103, %c0_104] : memref<2x1x64xf32, #tpu.memory_space<vmem>>, vector<1x1x64xf32>
    %244 = vector.shape_cast %243 : vector<1x1x64xf32> to vector<1x64xf32>
    %c1_105 = arith.constant 1 : index
    %c0_106 = arith.constant 0 : index
    %c0_107 = arith.constant 0 : index
    %245 = vector.load %arg10[%c1_105, %c0_106, %c0_107] : memref<2x1x64xf32, #tpu.memory_space<vmem>>, vector<1x1x64xf32>
    %246 = vector.shape_cast %245 : vector<1x1x64xf32> to vector<1x64xf32>
    %cst_108 = arith.constant dense<0.000000e+00> : vector<16xf32>
    %247 = vector.multi_reduction <add>, %242, %cst_108 [1] : vector<16x64xf32> to vector<16xf32>
    %248 = vector.shape_cast %247 : vector<16xf32> to vector<16x1xf32>
    %cst_109 = arith.constant 6.400000e+01 : f32
    %249 = vector.broadcast %cst_109 : f32 to vector<16x1xf32>
    %250 = arith.divf %248, %249 : vector<16x1xf32>
    %251 = vector.broadcast %250 : vector<16x1xf32> to vector<16x64xf32>
    %252 = arith.subf %242, %251 : vector<16x64xf32>
    %253 = arith.mulf %252, %252 : vector<16x64xf32>
    %cst_110 = arith.constant dense<0.000000e+00> : vector<16xf32>
    %254 = vector.multi_reduction <add>, %253, %cst_110 [1] : vector<16x64xf32> to vector<16xf32>
    %255 = vector.shape_cast %254 : vector<16xf32> to vector<16x1xf32>
    %cst_111 = arith.constant 6.400000e+01 : f32
    %256 = vector.broadcast %cst_111 : f32 to vector<16x1xf32>
    %257 = arith.divf %255, %256 : vector<16x1xf32>
    %258 = vector.broadcast %250 : vector<16x1xf32> to vector<16x64xf32>
    %259 = arith.subf %242, %258 : vector<16x64xf32>
    %cst_112 = arith.constant 9.99999996E-13 : f32
    %260 = vector.broadcast %cst_112 : f32 to vector<16x1xf32>
    %261 = arith.addf %257, %260 : vector<16x1xf32>
    %262 = math.rsqrt %261 : vector<16x1xf32>
    %263 = vector.broadcast %262 : vector<16x1xf32> to vector<16x64xf32>
    %264 = arith.mulf %259, %263 : vector<16x64xf32>
    %265 = vector.broadcast %244 : vector<1x64xf32> to vector<16x64xf32>
    %266 = arith.mulf %264, %265 : vector<16x64xf32>
    %267 = vector.broadcast %246 : vector<1x64xf32> to vector<16x64xf32>
    %268 = arith.addf %266, %267 : vector<16x64xf32>
    %c1_113 = arith.constant 1 : index
    %c0_114 = arith.constant 0 : index
    %c0_115 = arith.constant 0 : index
    %269 = vector.load %arg11[%c1_113, %c0_114, %c0_115] : memref<2x64x128xf32, #tpu.memory_space<vmem>>, vector<1x64x128xf32>
    %270 = vector.shape_cast %269 : vector<1x64x128xf32> to vector<64x128xf32>
    %cst_116 = arith.constant dense<0.000000e+00> : vector<16x128xf32>
    %271 = tpu.matmul %268, %270, %cst_116 {dimension_numbers = #tpu.dot_dimension_numbers<[1], [0], [0], [1], [0, 0, 1, 1], [], []>} : vector<16x64xf32>, vector<64x128xf32>, vector<16x128xf32> -> vector<16x128xf32>
    %c1_117 = arith.constant 1 : index
    %c0_118 = arith.constant 0 : index
    %c0_119 = arith.constant 0 : index
    %272 = vector.load %arg12[%c1_117, %c0_118, %c0_119] : memref<2x1x128xf32, #tpu.memory_space<vmem>>, vector<1x1x128xf32>
    %273 = vector.shape_cast %272 : vector<1x1x128xf32> to vector<1x128xf32>
    %274 = vector.broadcast %273 : vector<1x128xf32> to vector<16x128xf32>
    %275 = arith.addf %271, %274 : vector<16x128xf32>
    %276 = arith.mulf %275, %275 : vector<16x128xf32>
    %277 = arith.mulf %275, %276 : vector<16x128xf32>
    %cst_120 = arith.constant 4.471500e-02 : f32
    %278 = vector.broadcast %cst_120 : f32 to vector<16x128xf32>
    %279 = arith.mulf %278, %277 : vector<16x128xf32>
    %280 = arith.addf %275, %279 : vector<16x128xf32>
    %cst_121 = arith.constant 0.797884583 : f32
    %281 = vector.broadcast %cst_121 : f32 to vector<16x128xf32>
    %282 = arith.mulf %281, %280 : vector<16x128xf32>
    %283 = math.tanh %282 : vector<16x128xf32>
    %cst_122 = arith.constant 1.000000e+00 : f32
    %284 = vector.broadcast %cst_122 : f32 to vector<16x128xf32>
    %285 = arith.addf %284, %283 : vector<16x128xf32>
    %cst_123 = arith.constant 5.000000e-01 : f32
    %286 = vector.broadcast %cst_123 : f32 to vector<16x128xf32>
    %287 = arith.mulf %286, %285 : vector<16x128xf32>
    %288 = arith.mulf %275, %287 : vector<16x128xf32>
    %c1_124 = arith.constant 1 : index
    %c0_125 = arith.constant 0 : index
    %c0_126 = arith.constant 0 : index
    %289 = vector.load %arg13[%c1_124, %c0_125, %c0_126] : memref<2x128x64xf32, #tpu.memory_space<vmem>>, vector<1x128x64xf32>
    %290 = vector.shape_cast %289 : vector<1x128x64xf32> to vector<128x64xf32>
    %cst_127 = arith.constant dense<0.000000e+00> : vector<16x64xf32>
    %291 = tpu.matmul %288, %290, %cst_127 {dimension_numbers = #tpu.dot_dimension_numbers<[1], [0], [0], [1], [0, 0, 1, 1], [], []>} : vector<16x128xf32>, vector<128x64xf32>, vector<16x64xf32> -> vector<16x64xf32>
    %c1_128 = arith.constant 1 : index
    %c0_129 = arith.constant 0 : index
    %c0_130 = arith.constant 0 : index
    %292 = vector.load %arg14[%c1_128, %c0_129, %c0_130] : memref<2x1x64xf32, #tpu.memory_space<vmem>>, vector<1x1x64xf32>
    %293 = vector.shape_cast %292 : vector<1x1x64xf32> to vector<1x64xf32>
    %294 = vector.broadcast %293 : vector<1x64xf32> to vector<16x64xf32>
    %295 = arith.addf %291, %294 : vector<16x64xf32>
    %296 = arith.addf %268, %295 : vector<16x64xf32>
    %c1_131 = arith.constant 1 : index
    %c0_132 = arith.constant 0 : index
    %c0_133 = arith.constant 0 : index
    %297 = vector.load %arg15[%c1_131, %c0_132, %c0_133] : memref<2x1x64xf32, #tpu.memory_space<vmem>>, vector<1x1x64xf32>
    %298 = vector.shape_cast %297 : vector<1x1x64xf32> to vector<1x64xf32>
    %c1_134 = arith.constant 1 : index
    %c0_135 = arith.constant 0 : index
    %c0_136 = arith.constant 0 : index
    %299 = vector.load %arg16[%c1_134, %c0_135, %c0_136] : memref<2x1x64xf32, #tpu.memory_space<vmem>>, vector<1x1x64xf32>
    %300 = vector.shape_cast %299 : vector<1x1x64xf32> to vector<1x64xf32>
    %cst_137 = arith.constant dense<0.000000e+00> : vector<16xf32>
    %301 = vector.multi_reduction <add>, %296, %cst_137 [1] : vector<16x64xf32> to vector<16xf32>
    %302 = vector.shape_cast %301 : vector<16xf32> to vector<16x1xf32>
    %cst_138 = arith.constant 6.400000e+01 : f32
    %303 = vector.broadcast %cst_138 : f32 to vector<16x1xf32>
    %304 = arith.divf %302, %303 : vector<16x1xf32>
    %305 = vector.broadcast %304 : vector<16x1xf32> to vector<16x64xf32>
    %306 = arith.subf %296, %305 : vector<16x64xf32>
    %307 = arith.mulf %306, %306 : vector<16x64xf32>
    %cst_139 = arith.constant dense<0.000000e+00> : vector<16xf32>
    %308 = vector.multi_reduction <add>, %307, %cst_139 [1] : vector<16x64xf32> to vector<16xf32>
    %309 = vector.shape_cast %308 : vector<16xf32> to vector<16x1xf32>
    %cst_140 = arith.constant 6.400000e+01 : f32
    %310 = vector.broadcast %cst_140 : f32 to vector<16x1xf32>
    %311 = arith.divf %309, %310 : vector<16x1xf32>
    %312 = vector.broadcast %304 : vector<16x1xf32> to vector<16x64xf32>
    %313 = arith.subf %296, %312 : vector<16x64xf32>
    %cst_141 = arith.constant 9.99999996E-13 : f32
    %314 = vector.broadcast %cst_141 : f32 to vector<16x1xf32>
    %315 = arith.addf %311, %314 : vector<16x1xf32>
    %316 = math.rsqrt %315 : vector<16x1xf32>
    %317 = vector.broadcast %316 : vector<16x1xf32> to vector<16x64xf32>
    %318 = arith.mulf %313, %317 : vector<16x64xf32>
    %319 = vector.broadcast %298 : vector<1x64xf32> to vector<16x64xf32>
    %320 = arith.mulf %318, %319 : vector<16x64xf32>
    %321 = vector.broadcast %300 : vector<1x64xf32> to vector<16x64xf32>
    %322 = arith.addf %320, %321 : vector<16x64xf32>
    %323 = vector.shape_cast %322 : vector<16x64xf32> to vector<2x8x64xf32>
    %324 = vector.extract_strided_slice %323 {offsets = [0, 0, 0], sizes = [2, 1, 64], strides = [1, 1, 1]} : vector<2x8x64xf32> to vector<2x1x64xf32>
    %325 = vector.shape_cast %324 : vector<2x1x64xf32> to vector<2x64xf32>
    %c0_142 = arith.constant 0 : index
    %c0_143 = arith.constant 0 : index
    %326 = vector.load %arg17[%c0_142, %c0_143] : memref<64x64xf32, #tpu.memory_space<vmem>>, vector<64x64xf32>
    %cst_144 = arith.constant dense<0.000000e+00> : vector<2x64xf32>
    %327 = tpu.matmul %325, %326, %cst_144 {dimension_numbers = #tpu.dot_dimension_numbers<[1], [0], [0], [1], [0, 0, 1, 1], [], []>} : vector<2x64xf32>, vector<64x64xf32>, vector<2x64xf32> -> vector<2x64xf32>
    %c0_145 = arith.constant 0 : index
    %c0_146 = arith.constant 0 : index
    %328 = vector.load %arg18[%c0_145, %c0_146] : memref<1x64xf32, #tpu.memory_space<vmem>>, vector<1x64xf32>
    %329 = vector.broadcast %328 : vector<1x64xf32> to vector<2x64xf32>
    %330 = arith.addf %327, %329 : vector<2x64xf32>
    %cst_147 = arith.constant 0.000000e+00 : f32
    %331 = vector.broadcast %cst_147 : f32 to vector<2x64xf32>
    %332 = arith.maximumf %330, %331 : vector<2x64xf32>
    %c0_148 = arith.constant 0 : index
    %c0_149 = arith.constant 0 : index
    %333 = vector.load %arg19[%c0_148, %c0_149] : memref<64x3xf32, #tpu.memory_space<vmem>>, vector<64x3xf32>
    %cst_150 = arith.constant dense<0.000000e+00> : vector<2x3xf32>
    %334 = tpu.matmul %332, %333, %cst_150 {dimension_numbers = #tpu.dot_dimension_numbers<[1], [0], [0], [1], [0, 0, 1, 1], [], []>} : vector<2x64xf32>, vector<64x3xf32>, vector<2x3xf32> -> vector<2x3xf32>
    %c0_151 = arith.constant 0 : index
    %c0_152 = arith.constant 0 : index
    %335 = vector.load %arg20[%c0_151, %c0_152] : memref<1x3xf32, #tpu.memory_space<vmem>>, vector<1x3xf32>
    %336 = vector.broadcast %335 : vector<1x3xf32> to vector<2x3xf32>
    %337 = arith.addf %334, %336 : vector<2x3xf32>
    %c0_153 = arith.constant 0 : index
    %c0_154 = arith.constant 0 : index
    %338 = vector.load %arg21[%c0_153, %c0_154] : memref<2x3xf32, #tpu.memory_space<vmem>>, vector<2x3xf32>
    tpu.vector_store %arg21[%c0_153, %c0_154], %337 {strides = array<i32>} : memref<2x3xf32, #tpu.memory_space<vmem>>, vector<2x3xf32>,
    %cst_155 = arith.constant dense<0xFF800000> : vector<2xf32>
    %339 = vector.multi_reduction <maximumf>, %337, %cst_155 [1] : vector<2x3xf32> to vector<2xf32>
    %340 = vector.shape_cast %339 : vector<2xf32> to vector<2x1xf32>
    %341 = vector.broadcast %340 : vector<2x1xf32> to vector<2x3xf32>
    %342 = arith.subf %337, %341 : vector<2x3xf32>
    %343 = math.exp %342 : vector<2x3xf32>
    %cst_156 = arith.constant dense<0.000000e+00> : vector<2xf32>
    %344 = vector.multi_reduction <add>, %343, %cst_156 [1] : vector<2x3xf32> to vector<2xf32>
    %345 = vector.shape_cast %344 : vector<2xf32> to vector<2x1xf32>
    %346 = math.log %345 : vector<2x1xf32>
    %347 = vector.broadcast %346 : vector<2x1xf32> to vector<2x3xf32>
    %348 = arith.subf %342, %347 : vector<2x3xf32>
    %c0_157 = arith.constant 0 : index
    %c0_158 = arith.constant 0 : index
    %349 = vector.load %arg2[%c0_157, %c0_158] : memref<2x3xf32, #tpu.memory_space<vmem>>, vector<2x3xf32>
    %350 = arith.mulf %349, %348 : vector<2x3xf32>
    %351 = vector.shape_cast %350 : vector<2x3xf32> to vector<1x2x3xf32>
    %cst_159 = arith.constant dense<0.000000e+00> : vector<1xf32>
    %352 = vector.multi_reduction <add>, %351, %cst_159 [1, 2] : vector<1x2x3xf32> to vector<1xf32>
    %353 = vector.shape_cast %352 : vector<1xf32> to vector<1x1x1xf32>
    %354 = vector.extract %353[0, 0, 0] : f32 from vector<1x1x1xf32>
    %355 = vector.broadcast %354 : f32 to vector<1x1xf32>
    %cst_160 = arith.constant 0.000000e+00 : f32
    %356 = vector.broadcast %cst_160 : f32 to vector<1x1xf32>
    %357 = arith.subf %356, %355 : vector<1x1xf32>
    %cst_161 = arith.constant 2.000000e+00 : f32
    %358 = vector.broadcast %cst_161 : f32 to vector<1x1xf32>
    %359 = arith.divf %357, %358 : vector<1x1xf32>
    %c0_162 = arith.constant 0 : index
    %c0_163 = arith.constant 0 : index
    %360 = vector.load %arg22[%c0_162, %c0_163] : memref<1x1xf32, #tpu.memory_space<vmem>>, vector<1x1xf32>
    tpu.vector_store %arg22[%c0_162, %c0_163], %359 {strides = array<i32>} : memref<1x1xf32, #tpu.memory_space<vmem>>, vector<1x1xf32>,
    return
  }
}

</mosaic_0001>

<bundles_post_ra>
// kernel: bert_forward.1
= control target key start
LH: loop header
LB: loop body
LE: loop exit
PB: predicated region body
PF: predicated region fallthrough
CT: control target
= control target key end

     0   :  { %s4525_s0 = inlined_call_operand.vmem [shape: f32[2,8,64], index: 0, kind: input, shape index: {}]   ;;  %s4526_s1 = inlined_call_operand.vmem [shape: f32[2,1,8], index: 1, kind: input, shape index: {}]   ;;  %s4527_s2 = inlined_call_operand.vmem [shape: f32[2,3], index: 2, kind: input, shape index: {}]   ;;  %s4528_s3 = inlined_call_operand.vmem [shape: f32[1,64], index: 3, kind: input, shape index: {}]   ;;  %s4529_s4 = inlined_call_operand.vmem [shape: f32[1,64], index: 4, kind: input, shape index: {}]   ;;  %s4530_s5 = inlined_call_operand.vmem [shape: f32[2,64,192], index: 5, kind: input, shape index: {}]   ;;  %s4531_s6 = inlined_call_operand.vmem [shape: f32[2,1,192], index: 6, kind: input, shape index: {}]   ;;  %s4532_s7 = inlined_call_operand.vmem [shape: f32[2,64,64], index: 7, kind: input, shape index: {}]   ;;  %s4533_s8 = inlined_call_operand.vmem [shape: f32[2,1,64], index: 8, kind: input, shape index: {}]   ;;  %s4534_s9 = inlined_call_operand.vmem [shape: f32[2,1,64], index: 9, kind: input, shape index: {}]   ;;  %s4535_s10 = inlined_call_operand.vmem [shape: f32[2,1,64], index: 10, kind: input, shape index: {}]   ;;  %s4536_s11 = inlined_call_operand.vmem [shape: f32[2,64,128], index: 11, kind: input, shape index: {}]   ;;  %s4537_s12 = inlined_call_operand.vmem [shape: f32[2,1,128], index: 12, kind: input, shape index: {}]   ;;  %s4538_s13 = inlined_call_operand.vmem [shape: f32[2,128,64], index: 13, kind: input, shape index: {}]   ;;  %s4539_s14 = inlined_call_operand.vmem [shape: f32[2,1,64], index: 14, kind: input, shape index: {}]   ;;  %s4540_s15 = inlined_call_operand.vmem [shape: f32[2,1,64], index: 15, kind: input, shape index: {}]   ;;  %s4541_s16 = inlined_call_operand.vmem [shape: f32[2,1,64], index: 16, kind: input, shape index: {}]   ;;  %s4542_s17 = inlined_call_operand.vmem [shape: f32[64,64], index: 17, kind: input, shape index: {}]   ;;  %s4543_s18 = inlined_call_operand.vmem [shape: f32[1,64], index: 18, kind: input, shape index: {}]   ;;  %s4544_s19 = inlined_call_operand.vmem [shape: f32[64,3], index: 19, kind: input, shape index: {}]   ;;  %s4545_s20 = inlined_call_operand.vmem [shape: f32[1,3], index: 20, kind: input, shape index: {}]   ;;  %s4546_s21 = inlined_call_operand.hbm [shape: f32[2,3], index: 21, kind: output, shape index: {0}]   ;;  %s4547_s22 = inlined_call_operand.hbm [shape: f32[1,1], index: 22, kind: output, shape index: {1}]  }
   0x1   :  { %4552 = sst [smem:[#allocation8_spill]] %s4525_s0 }
   0x2   :  { %4553 = sst [smem:[#allocation9_spill]] %s4526_s1 }
   0x3   :  { %4554 = sst [smem:[#allocation10_spill]] %s4527_s2 }
   0x4   :  { %4555 = sst [smem:[#allocation11_spill]] %s4528_s3 }
   0x5   :  { %4556 = sst [smem:[#allocation12_spill]] %s4529_s4 }
   0x6   :  { %4557 = sst [smem:[#allocation13_spill]] %s4530_s5 }
   0x7   :  { %4558 = sst [smem:[#allocation14_spill]] %s4531_s6 }
   0x8   :  { %28 = vsyncpa [#allocation3], 0  ;;  %s4559_s29 = sld [smem:[#allocation8_spill]]  ;;  %vm76_vm0 = vcmask 523264  }
   0xe   :  { %v72_v0 = vld [vmem:[%s4559_s29] sm:$0xff]  ;;  %v73_v1 = vld [vmem:[%s4559_s29 + $0x8] sm:$0xff] }
   0xf   :  { %29 = vsyncpa [#allocation5], 0  ;;  %v77_v2 = vsel %vm76_vm0, %v72_v0, 0.0  ;;  %v80_v3 = vsel %vm76_vm0, %v73_v1, 0.0  ;;  %s4560_s1 = sld [smem:[#allocation13_spill]]  ;;  %v3729_v33 = vmov 0.0   ;;  %v140_v55 = vlaneseq }
  0x10   :  { %78 = vadd.xlane.f32.xlu0 %v77_v2  ;;  %220 = vmatprep.mubr.f32.mxu0 %v3729_v33  ;;  %s4561_s26 = sld [smem:[#allocation11_spill]]  ;;  %s4562_s3 = sld [smem:[#allocation12_spill]]  ;;  %vm3730_vm1 = vmmov 0   ;;  %vm245_vm2 = vcmask 261120   ;;  %vm413_vm3 = vcmask 64512   ;;  %vm2678_vm4 = vcmask 1041409  }
  0x11   :  { %3149 = vmatprep.subr.mxu1 %v3729_v33  ;;  %v3928_v56 = vshrl.u32 %v140_v55, 7  ;;  %3151 = vmatprep.mubr.msk.f32.mxu1 %vm3730_vm1, %v3729_v33  ;;  %s4563_s30 = sld [smem:[#allocation14_spill]]  ;;  %s3731_s4 = smov 64   ;;  %vm2841_vm5 = vcmask 17408  }
  0x12   :  { %s4564_s5 = sld [smem:[#allocation9_spill]]  ;;  %s3732_s25 = smov 32  }
  0x13   :  { %v142_v57 = vsub.s32 0, %v3928_v56  ;;  %v146_v61 = vsub.s32 1, %v3928_v56  ;;  %s3735_s0 = smov [#allocation2]  }
  0x14   :  { %81 = vadd.xlane.f32.xlu0 %v80_v3  ;;  %s2879_s23 = sshll.u32 %s3735_s0, 4  ;;  %s2880_s23 = int_to_ptr.vmem [resolvable:$true] %s2879_s23 }
  0x15   :  { %v123_v14 = vld [vmem:[%s4560_s1 + $0x8] sm:$0xff]  ;;  %v125_v15 = vld [vmem:[%s4560_s1 + $0x18] sm:$0xff]  ;;  %v122_v17 = vld [vmem:[%s4560_s1] sm:$0xff]  ;;  %p3686_p1 = scmp.lt.s32.totalorder %s2880_s23, %s2880_s23 }
  0x16   :  { %v3419_v16 = vpack.c.bf16 %v125_v15, %v123_v14  ;;  %v124_v18 = vld [vmem:[%s4560_s1 + $0x10] sm:$0xff]  ;;  %v127_v20 = vld [vmem:[%s4560_s1 + $0x28] sm:$0xff]  ;;  %v129_v21 = vld [vmem:[%s4560_s1 + $0x38] sm:$0xff] }
  0x17   :  { %v3421_v19 = vpack.c.bf16 %v124_v18, %v122_v17  ;;  %v3423_v22 = vpack.c.bf16 %v129_v21, %v127_v20  ;;  %v126_v23 = vld [vmem:[%s4560_s1 + $0x20] sm:$0xff]  ;;  %v128_v24 = vld [vmem:[%s4560_s1 + $0x30] sm:$0xff]  ;;  %v131_v26 = vld [vmem:[%s4560_s1 + $0x48] sm:$0xff] }
  0x18   :  { %3420 = vmatprep.subr.bf16.mxu0 %v3419_v16  ;;  %v3425_v25 = vpack.c.bf16 %v128_v24, %v126_v23  ;;  %v133_v27 = vld [vmem:[%s4560_s1 + $0x58] sm:$0xff]  ;;  %v130_v28 = vld [vmem:[%s4560_s1 + $0x40] sm:$0xff]  ;;  %v132_v30 = vld [vmem:[%s4560_s1 + $0x50] sm:$0xff] }
  0x19   :  { %3422 = vmatpush1.bf16.msra.mxu0 %v3421_v19  ;;  %v3427_v29 = vpack.c.bf16 %v133_v27, %v131_v26  ;;  %v135_v31 = vld [vmem:[%s4560_s1 + $0x68] sm:$0xff]  ;;  %v137_v32 = vld [vmem:[%s4560_s1 + $0x78] sm:$0xff]  ;;  %v3429_v34 = vpack.c.bf16 %v132_v30, %v130_v28  ;;  %v134_v36 = vld [vmem:[%s4560_s1 + $0x60] sm:$0xff] }
  0x1a   :  { %3424 = vmatprep.subr.bf16.mxu0 %v3423_v22  ;;  %v3431_v35 = vpack.c.bf16 %v137_v32, %v135_v31  ;;  %v136_v37 = vld [vmem:[%s4560_s1 + $0x70] sm:$0xff]  ;;  %v2901_v46 = vld [vmem:[%s4561_s26] ss:$0 sm:$0xff]  ;;  %v3970_v14 = vld [vmem:[%s4564_s5 + $0x1] ss:$0 sm:$0xff]  ;;  %s3733_s26 = smov 96  }
  0x1b   :  { %v3433_v38 = vpack.c.bf16 %v136_v37, %v134_v36  ;;  %v2902_v48 = vld [vmem:[%s4562_s3] ss:$0 sm:$0xff] }
  0x1c   :  { %v138_v58 = vld [vmem:[%s4563_s30] sm:$0x3] }
  0x1d   :  { %3426 = vmatpush1.bf16.msra.mxu0 %v3425_v25  ;;  %v143_v59 = vrot.slane %v138_v58, %v142_v57 }
  0x1e   :  { %3428 = vmatprep.subr.bf16.mxu0 %v3427_v29 }
  0x21   :  { %3430 = vmatpush1.bf16.msra.mxu0 %v3429_v34 }
  0x22   :  { %3432 = vmatprep.subr.bf16.mxu0 %v3431_v35 }
  0x25   :  { %3434 = vmatpush1.bf16.msra.mxu0 %v3433_v38 }
  0x26   :  { %3174 = vmatprep.subr.mxu0 %v3729_v33 }
  0x9d   :  { %v79_v4 = vpop.xlane.xlu0 %78 }
  0x9e   :  { %v84_v5 = vmul.f32 0.015625, %v79_v4 }
  0xa0   :  { %v86_v6 = vsub.f32 %v72_v0, %v84_v5  ;;  %v147_v0 = vrot.slane %v138_v58, %v146_v61 }
  0xa1   :  { %v82_v7 = vpop.xlane.xlu0 %81 }
  0xa2   :  { %v85_v8 = vmul.f32 0.015625, %v82_v7  ;;  %v88_v9 = vmul.f32 %v86_v6, %v86_v6 }
  0xa4   :  { %v87_v10 = vsub.f32 %v73_v1, %v85_v8  ;;  %v90_v11 = vsel %vm76_vm0, %v88_v9, 0.0  ;;  %v3964_v9 = vld [vmem:[%s4564_s5] ss:$0 sm:$0xff]  ;;  %s3681_s5 = scalar_lea.vmem %s2880_s23, 32 }
  0xa5   :  { %91 = vadd.xlane.f32.xlu1 %v90_v11  ;;  %p3682_p0 = scmp.ne.s32.totalorder %s2880_s23, %s3681_s5  ;;  %p3687_p2 = scmp.lt.s32.totalorder %s3681_s5, %s3681_s5 }
  0xa6   :  { %v89_v12 = vmul.f32 %v87_v10, %v87_v10 }
  0xa7   :  { %p3688_p3 = por %p3687_p2, %p3686_p1 }
  0xa8   :  { %v93_v13 = vsel %vm76_vm0, %v89_v12, 0.0 }
  0xa9   :  { %94 = vadd.xlane.f32.xlu1 %v93_v13  ;;  %p3689_p4 = pnand %p3688_p3, %p3682_p0 }
 0x132   :  { %v92_v39 = vpop.xlane.xlu1 %91 }
 0x133   :  { %v96_v40 = vmul.f32 0.015625, %v92_v39 }
 0x135   :  { %v98_v41 = vadd.f32 1e-12, %v96_v40 }
 0x136   :  { %v95_v42 = vpop.xlane.xlu1 %94 }
 0x137   :  { %3617 = vrsqrt.f32 %v98_v41  ;;  %v97_v43 = vmul.f32 0.015625, %v95_v42 }
 0x139   :  { %v99_v44 = vadd.f32 1e-12, %v97_v43 }
 0x13b   :  { %3619 = vrsqrt.f32 %v99_v44 }
 0x141   :  { %v3618_v45 = vpop.eup %3617 }
 0x142   :  { %v102_v47 = vmul.f32 %v3618_v45, %v86_v6 }
 0x144   :  { %v110_v49 = vmul.f32 %v2901_v46, %v102_v47 }
 0x145   :  { %v3620_v50 = vpop.eup %3619 }
 0x146   :  { %v3919_v51 = vadd.f32 %v2902_v48, %v110_v49  ;;  %v103_v52 = vmul.f32 %v3620_v50, %v87_v10 }
 0x148   :  { %2903 = vmatmul.mubr.msk.f32.vlgmr.msra.gmra.mrb[0].mxu0 %vm76_vm0, %v3919_v51  ;;  %v111_v53 = vmul.f32 %v2901_v46, %v103_v52 }
 0x149   :  { %226 = vmatprep.mubr.f32.mxu0 %v3729_v33 }
 0x14a   :  { %v3924_v54 = vadd.f32 %v2902_v48, %v111_v53 }
 0x14c   :  { %2904 = vmatmul.mubr.msk.f32.gmra.mrb[2].mxu0 %vm76_vm0, %v3924_v54 }
 0x14d   :  { %3176 = vmatprep.mubr.msk.f32.mxu0 %vm3730_vm1, %v3729_v33 }
 0x21b   :  { %v222_v60 = vpop.f32.mrb[0].mxu0 }
 0x21c   :  { %v223_v62 = vadd.f32 %v222_v60, %v143_v59  ;;  %v224_v63 = vpop.f32.mrb[1].mxu0 }
 0x21d   :  { %v3954_v7 = vadd.f32 %v224_v63, %v147_v0 }
 0x21e   :  { %243 = vrot.lane.b32.xlu0 %v223_v62, %s3731_s4 }
 0x21f   :  { %v228_v1 = vpop.f32.mrb[2].mxu0 }
 0x220   :  { %v229_v2 = vadd.f32 %v228_v1, %v143_v59  ;;  %v230_v3 = vpop.f32.mrb[3].mxu0 }
 0x221   :  { %v3944_v4 = vadd.f32 %v230_v3, %v147_v0 }
 0x222   :  { %321 = vrot.lane.b32.xlu1 %v229_v2, %s3731_s4 }
 0x290   :  { %v244_v5 = vpop.permute.xlu0 %243 }
 0x291   :  { %3150 = vmatpush3.xpose.msk.msra.mxu1 %vm245_vm2, %v244_v5 }
 0x292   :  { %3154 = vmatprep.subr.mxu1 %v3729_v33 }
 0x294   :  { %v322_v6 = vpop.permute.xlu1 %321  ;;  %3152 = vmatmul.mubr.msk.f32.vlgmr.msra.gmra.mrb[0].mxu1 %vm245_vm2, %v223_v62 }
 0x295   :  { %3155 = vmatpush3.xpose.msk.msra.mxu1 %vm245_vm2, %v322_v6  ;;  %3156 = vmatprep.mubr.msk.f32.mxu1 %vm3730_vm1, %v3729_v33 }
 0x296   :  { %3159 = vmatprep.subr.mxu1 %v3729_v33 }
 0x298   :  { %3157 = vmatmul.mubr.msk.f32.vlgmr.msra.gmra.mrb[2].mxu1 %vm245_vm2, %v229_v2 }
 0x299   :  { %3160 = vmatpush3.msra.mxu1 %v3954_v7  ;;  %3161 = vmatprep.mubr.msk.f32.mxu1 %vm3730_vm1, %v3729_v33 }
 0x29a   :  { %3164 = vmatprep.subr.mxu1 %v3729_v33 }
 0x367   :  { %v316_v8 = vpop.f32.mrb[0].mxu1 }
 0x368   :  { %v397_v10 = vmul.f32 0.17677669, %v316_v8  ;;  %v3153_v11 = vpop.f32.mrb[1].mxu1 }
 0x36a   :  { %v411_v12 = vadd.f32 %v3964_v9, %v397_v10 }
 0x36b   :  { %v393_v13 = vpop.f32.mrb[2].mxu1 }
 0x36c   :  { %v398_v15 = vmul.f32 0.17677669, %v393_v13  ;;  %v3158_v16 = vpop.f32.mrb[3].mxu1  ;;  %v414_v17 = vsel %vm413_vm3, %v411_v12, -inf }
 0x36d   :  { %415 = vmax.xlane.f32.xlu1 %v414_v17  ;;  %v237_v17 = vld [vmem:[%s4532_s7 + $0x20] sm:$0xff] }
 0x36e   :  { %v412_v18 = vadd.f32 %v3970_v14, %v398_v15 }
 0x370   :  { %v417_v19 = vsel %vm413_vm3, %v412_v18, -inf }
 0x371   :  { %418 = vmax.xlane.f32.xlu0 %v417_v19 }
 0x37e   :  { %662 = vrot.lane.b32.xlu1 %v229_v2, %s3732_s25 }
 0x382   :  { %582 = vrot.lane.b32.xlu1 %v223_v62, %s3733_s26 }
 0x3fa   :  { %v416_v20 = vpop.xlane.xlu1 %415 }
 0x3fb   :  { %v420_v21 = vsub.f32 %v411_v12, %v416_v20  ;;  %v240_v20 = vld [vmem:[%s4532_s7 + $0x38] sm:$0xff] }
 0x3fd   :  { %v422_v22 = vmul.f32 1.442695, %v420_v21 }
 0x3fe   :  { %v663_v23 = vpop.permute.xlu1 %662  ;;  %v419_v24 = vpop.xlane.xlu0 %418 }
 0x3ff   :  { %3621 = vpow2.f32 %v422_v22  ;;  %v421_v25 = vsub.f32 %v412_v18, %v419_v24  ;;  %3175 = vmatpush3.xpose.msk.msra.mxu0 %vm245_vm2, %v663_v23  ;;  %v239_v18 = vld [vmem:[%s4532_s7 + $0x30] sm:$0xff]  ;;  %v233_v22 = vld [vmem:[%s4532_s7] sm:$0xff]  ;;  %v234_v23 = vld [vmem:[%s4532_s7 + $0x8] sm:$0xff] }
 0x400   :  { %3184 = vmatprep.subr.mxu0 %v3729_v33  ;;  %v3439_v21 = vpack.c.bf16 %v240_v20, %v239_v18  ;;  %v3443_v24 = vpack.c.bf16 %v234_v23, %v233_v22  ;;  %v1249_v22 = vld [vmem:[%s4538_s13 + $0x8] sm:$0xff] }
 0x401   :  { %v424_v26 = vmul.f32 1.442695, %v421_v25 }
 0x402   :  { %v583_v31 = vpop.permute.xlu1 %582 }
 0x403   :  { %3623 = vpow2.f32 %v424_v26 }
 0x409   :  { %v3622_v27 = vpop.eup %3621 }
 0x40a   :  { %v426_v28 = vsel %vm413_vm3, %v3622_v27, 0.0 }
 0x40b   :  { %427 = vadd.xlane.f32.xlu0 %v426_v28  ;;  %v236_v28 = vld [vmem:[%s4532_s7 + $0x18] sm:$0xff] }
 0x40d   :  { %v3624_v29 = vpop.eup %3623 }
 0x40e   :  { %v429_v30 = vsel %vm413_vm3, %v3624_v29, 0.0 }
 0x40f   :  { %430 = vadd.xlane.f32.xlu1 %v429_v30 }
 0x420   :  { %660 = vrot.lane.b32.xlu1 %v229_v2, %s3733_s26 }
 0x421   :  { %584 = vrot.lane.b32.xlu0 %v223_v62, %s3732_s25 }
 0x498   :  { %v428_v32 = vpop.xlane.xlu0 %427 }
 0x499   :  { %3625 = vrcp.f32 %v428_v32  ;;  %v2923_v32 = vld [vmem:[%s4533_s8] ss:$0 sm:$0xff] }
 0x49c   :  { %v431_v34 = vpop.xlane.xlu1 %430  ;;  %v585_v40 = vpop.permute.xlu0 %584 }
 0x49d   :  { %3627 = vrcp.f32 %v431_v34 }
 0x4a0   :  { %v661_v35 = vpop.permute.xlu1 %660 }
 0x4a1   :  { %3177 = vmatmul.mubr.msk.f32.vlgmr.msra.gmra.mrb[4].mxu0 %vm245_vm2, %v661_v35 }
 0x4a2   :  { %3186 = vmatprep.mubr.msk.f32.mxu0 %vm3730_vm1, %v3729_v33 }
 0x4a3   :  { %v3626_v36 = vpop.eup %3625 }
 0x4a4   :  { %v434_v37 = vmul.f32 %v3626_v36, %v3622_v27  ;;  %v235_v27 = vld [vmem:[%s4532_s7 + $0x10] sm:$0xff] }
 0x4a5   :  { %v3447_v30 = vpack.c.bf16 %v236_v28, %v235_v27  ;;  %v1252_v27 = vld [vmem:[%s4538_s13 + $0x20] sm:$0xff]  ;;  %v1253_v28 = vld [vmem:[%s4538_s13 + $0x28] sm:$0xff] }
 0x4a6   :  { %3162 = vmatmul.mubr.msk.f32.vlgmr.msra.gmra.mrb[4].mxu1 %vm413_vm3, %v434_v37 }
 0x4a7   :  { %v3628_v38 = vpop.eup %3627  ;;  %3165 = vmatpush3.msra.mxu1 %v3944_v4  ;;  %3166 = vmatprep.mubr.msk.f32.mxu1 %vm3730_vm1, %v3729_v33 }
 0x4a8   :  { %v435_v39 = vmul.f32 %v3628_v38, %v3624_v29  ;;  %3169 = vmatprep.subr.mxu1 %v3729_v33 }
 0x4aa   :  { %3167 = vmatmul.mubr.msk.f32.vlgmr.msra.gmra.mrb[6].mxu1 %vm413_vm3, %v435_v39 }
 0x4ab   :  { %3171 = vmatprep.mubr.msk.f32.mxu1 %vm3730_vm1, %v3729_v33 }
 0x4ae   :  { %3170 = vmatpush3.xpose.msk.msra.mxu1 %vm245_vm2, %v585_v40 }
 0x4af   :  { %3179 = vmatprep.subr.mxu1 %v3729_v33 }
 0x4b1   :  { %3172 = vmatmul.mubr.msk.f32.vlgmr.msra.gmra.mrb[8].mxu1 %vm245_vm2, %v583_v31 }
 0x4b2   :  { %3181 = vmatprep.mubr.msk.f32.mxu1 %vm3730_vm1, %v3729_v33 }
 0x574   :  { %v734_v41 = vpop.f32.mrb[4].mxu0 }
 0x575   :  { %v739_v42 = vmul.f32 0.17677669, %v734_v41  ;;  %v3178_v43 = vpop.f32.mrb[5].mxu0 }
 0x577   :  { %v741_v44 = vadd.f32 %v3970_v14, %v739_v42 }
 0x579   :  { %v4000_v45 = vpop.f32.mrb[4].mxu1  ;;  %v745_v46 = vsel %vm413_vm3, %v741_v44, -inf }
 0x57a   :  { %746 = vmax.xlane.f32.xlu1 %v745_v46  ;;  %v3163_v47 = vpop.f32.mrb[5].mxu1 }
 0x57d   :  { %v4003_v48 = vpop.f32.mrb[6].mxu1 }
 0x57e   :  { %v3168_v49 = vpop.f32.mrb[7].mxu1 }
 0x584   :  { %v656_v50 = vpop.f32.mrb[8].mxu1 }
 0x585   :  { %v738_v52 = vmul.f32 0.17677669, %v656_v50  ;;  %v3173_v53 = vpop.f32.mrb[9].mxu1 }
 0x587   :  { %v740_v55 = vadd.f32 %v3964_v9, %v738_v52  ;;  %v1135_v52 = vld [vmem:[%s4536_s11 + $0x8] sm:$0xff] }
 0x589   :  { %v742_v58 = vsel %vm413_vm3, %v740_v55, -inf }
 0x58a   :  { %743 = vmax.xlane.f32.xlu0 %v742_v58  ;;  %v1137_v58 = vld [vmem:[%s4536_s11 + $0x18] sm:$0xff] }
 0x58b   :  { %842 = vrot.lane.b32.xlu1 %v3944_v4, %s3733_s26 }
 0x607   :  { %v747_v59 = vpop.xlane.xlu1 %746 }
 0x608   :  { %v749_v60 = vsub.f32 %v741_v44, %v747_v59 }
 0x60a   :  { %v752_v62 = vmul.f32 1.442695, %v749_v60  ;;  %v1138_v60 = vld [vmem:[%s4536_s11 + $0x20] sm:$0xff] }
 0x60b   :  { %v843_v63 = vpop.permute.xlu1 %842 }
 0x60c   :  { %3629 = vpow2.f32 %v752_v62  ;;  %3185 = vmatpush3.msra.mxu0 %v843_v63  ;;  %v1139_v62 = vld [vmem:[%s4536_s11 + $0x28] sm:$0xff] }
 0x60d   :  { %v3459_v63 = vpack.c.bf16 %v1139_v62, %v1138_v60 }
 0x616   :  { %v3630_v0 = vpop.eup %3629 }
 0x617   :  { %v744_v1 = vpop.xlane.xlu0 %743  ;;  %v757_v2 = vsel %vm413_vm3, %v3630_v0, 0.0 }
 0x618   :  { %v748_v3 = vsub.f32 %v740_v55, %v744_v1  ;;  %758 = vadd.xlane.f32.xlu0 %v757_v2  ;;  %v1136_v55 = vld [vmem:[%s4536_s11 + $0x10] sm:$0xff]  ;;  %v1141_v1 = vld [vmem:[%s4536_s11 + $0x38] sm:$0xff] }
 0x619   :  { %v3455_v59 = vpack.c.bf16 %v1137_v58, %v1136_v55 }
 0x61a   :  { %v750_v5 = vmul.f32 1.442695, %v748_v3 }
 0x61c   :  { %3631 = vpow2.f32 %v750_v5 }
 0x626   :  { %v3632_v6 = vpop.eup %3631 }
 0x627   :  { %v754_v8 = vsel %vm413_vm3, %v3632_v6, 0.0 }
 0x628   :  { %755 = vadd.xlane.f32.xlu0 %v754_v8 }
 0x63e   :  { %765 = vrot.lane.b32.xlu0 %v3954_v7, %s3733_s26  ;;  %v238_v7 = vld [vmem:[%s4532_s7 + $0x28] sm:$0xff] }
 0x63f   :  { %v3435_v19 = vpack.c.bf16 %v238_v7, %v237_v17  ;;  %v2925_v17 = vld [vmem:[%s4535_s10] ss:$0 sm:$0xff] }
 0x6a5   :  { %v759_v4 = vpop.xlane.xlu0 %758 }
 0x6a6   :  { %3633 = vrcp.f32 %v759_v4 }
 0x6b0   :  { %v3634_v10 = vpop.eup %3633 }
 0x6b1   :  { %v763_v11 = vmul.f32 %v3634_v10, %v3630_v0  ;;  %v1140_v0 = vld [vmem:[%s4536_s11 + $0x30] sm:$0xff] }
 0x6b2   :  { %v3463_v2 = vpack.c.bf16 %v1141_v1, %v1140_v0 }
 0x6b3   :  { %3187 = vmatmul.mubr.msk.f32.vlgmr.msra.gmra.mrb[6].mxu0 %vm413_vm3, %v763_v11 }
 0x6b5   :  { %v756_v12 = vpop.xlane.xlu0 %755 }
 0x6b6   :  { %3635 = vrcp.f32 %v756_v12  ;;  %v2924_v12 = vld [vmem:[%s4534_s9] ss:$0 sm:$0xff] }
 0x6b9   :  { %v766_v13 = vpop.permute.xlu0 %765 }
 0x6ba   :  { %3180 = vmatpush3.msra.mxu1 %v766_v13 }
 0x6bb   :  { %3436 = vmatprep.subr.bf16.mxu1 %v3435_v19 }
 0x6c0   :  { %v3636_v15 = vpop.eup %3635 }
 0x6c1   :  { %v762_v16 = vmul.f32 %v3636_v15, %v3632_v6 }
 0x6c3   :  { %3182 = vmatmul.mubr.msk.f32.vlgmr.msra.gmra.mrb[10].mxu1 %vm413_vm3, %v762_v16 }
 0x6c4   :  { %3438 = vmatpush3.bf16.msra.mxu1 %v3435_v19 }
 0x6c5   :  { %3440 = vmatprep.subr.bf16.mxu1 %v3439_v21 }
 0x6c8   :  { %3442 = vmatpush3.bf16.msra.mxu1 %v3439_v21  ;;  %v1248_v21 = vld [vmem:[%s4538_s13] sm:$0xff] }
 0x6c9   :  { %3444 = vmatprep.subr.bf16.mxu1 %v3443_v24  ;;  %v3467_v23 = vpack.c.bf16 %v1249_v22, %v1248_v21 }
 0x786   :  { %v914_v25 = vpop.f32.mrb[6].mxu0 }
 0x787   :  { %v3188_v26 = vpop.f32.mrb[7].mxu0 }
 0x796   :  { %v837_v29 = vpop.f32.mrb[10].mxu1 }
 0x797   :  { %v3183_v31 = vpop.f32.mrb[11].mxu1  ;;  %3197 = vmatprep.mubr.msk.f32.mxu1 %vm245_vm2, %v837_v29  ;;  %v3475_v29 = vpack.c.bf16 %v1253_v28, %v1252_v27 }
 0x798   :  { %3198 = vmatmul.mubr.msk.f32.vlgmr.msra.gmra.mrb[12].mxu1 %vm245_vm2, %v914_v25  ;;  %v1251_v25 = vld [vmem:[%s4538_s13 + $0x18] sm:$0xff] }
 0x799   :  { %3446 = vmatpush3.bf16.msra.mxu1 %v3443_v24  ;;  %3208 = vmatprep.mubr.msk.f32.mxu1 %vm245_vm2, %v4000_v45  ;;  %v1250_v24 = vld [vmem:[%s4538_s13 + $0x10] sm:$0xff]  ;;  %v1255_v31 = vld [vmem:[%s4538_s13 + $0x38] sm:$0xff] }
 0x79a   :  { %3448 = vmatprep.subr.bf16.mxu1 %v3447_v30  ;;  %v3471_v26 = vpack.c.bf16 %v1251_v25, %v1250_v24 }
 0x79d   :  { %3450 = vmatpush3.bf16.msra.mxu1 %v3447_v30  ;;  %v1254_v30 = vld [vmem:[%s4538_s13 + $0x30] sm:$0xff] }
 0x79e   :  { %3468 = vmatprep.subr.bf16.mxu1 %v3467_v23 }
 0x7a0   :  { %3209 = vmatmul.mubr.msk.f32.vlgmr.msra.gmra.mrb[12].mxu1 %vm245_vm2, %v4003_v48 }
 0x7a1   :  { %3470 = vmatpush3.bf16.msra.mxu1 %v3467_v23 }
 0x7a2   :  { %3472 = vmatprep.subr.bf16.mxu1 %v3471_v26 }
 0x7a5   :  { %3474 = vmatpush3.bf16.msra.mxu1 %v3471_v26 }
 0x7a6   :  { %3476 = vmatprep.subr.bf16.mxu1 %v3475_v29 }
 0x7a9   :  { %3478 = vmatpush3.bf16.msra.mxu1 %v3475_v29 }
 0x873   :  { %v3210_v34 = vpop.f32.mrb[12].mxu1 }
 0x874   :  { %v1087_v35 = vadd.f32 %v3210_v34, %v2923_v32  ;;  %v1071_v36 = vpop.f32.mrb[13].mxu1  ;;  %v1256_v34 = vld [vmem:[%s4538_s13 + $0x40] sm:$0xff] }
 0x875   :  { %v1086_v37 = vadd.f32 %v2923_v32, %v1071_v36  ;;  %v3479_v32 = vpack.c.bf16 %v1255_v31, %v1254_v30  ;;  %v1258_v36 = vld [vmem:[%s4538_s13 + $0x50] sm:$0xff]  ;;  %v2935_v30 = vld [vmem:[%s4560_s1 + $0x98] sm:$0xff] }
 0x876   :  { %v1089_v38 = vadd.f32 %v1087_v35, %v3924_v54  ;;  %v1257_v35 = vld [vmem:[%s4538_s13 + $0x48] sm:$0xff] }
 0x877   :  { %v1088_v39 = vadd.f32 %v1086_v37, %v3919_v51  ;;  %v1134_v51 = vld [vmem:[%s4536_s11] sm:$0xff]  ;;  %3480 = vmatprep.subr.bf16.mxu1 %v3479_v32  ;;  %v3483_v37 = vpack.c.bf16 %v1257_v35, %v1256_v34  ;;  %v2934_v34 = vld [vmem:[%s4560_s1 + $0x90] sm:$0xff] }
 0x878   :  { %v1095_v40 = vsel %vm76_vm0, %v1089_v38, 0.0  ;;  %v3451_v53 = vpack.c.bf16 %v1135_v52, %v1134_v51  ;;  %3482 = vmatpush3.bf16.msra.mxu1 %v3479_v32  ;;  %v2932_v32 = vld [vmem:[%s4560_s1 + $0x80] sm:$0xff] }
 0x879   :  { %1096 = vadd.xlane.f32.xlu0 %v1095_v40  ;;  %v1092_v41 = vsel %vm76_vm0, %v1088_v39, 0.0  ;;  %v1260_v40 = vld [vmem:[%s4538_s13 + $0x60] sm:$0xff]  ;;  %3484 = vmatprep.subr.bf16.mxu1 %v3483_v37  ;;  %v3501_v35 = vpack.c.bf16 %v2934_v34, %v2932_v32 }
 0x87a   :  { %1093 = vadd.xlane.f32.xlu1 %v1092_v41  ;;  %3452 = vmatprep.subr.bf16.mxu0 %v3451_v53  ;;  %v1261_v41 = vld [vmem:[%s4538_s13 + $0x68] sm:$0xff] }
 0x87b   :  { %3454 = vmatpush3.bf16.msra.mxu0 %v3451_v53 }
 0x87c   :  { %3456 = vmatprep.subr.bf16.mxu0 %v3455_v59  ;;  %3486 = vmatpush3.bf16.msra.mxu1 %v3483_v37  ;;  %v2939_v37 = vld [vmem:[%s4560_s1 + $0xb8] sm:$0xff] }
 0x87f   :  { %3458 = vmatpush3.bf16.msra.mxu0 %v3455_v59 }
 0x880   :  { %3460 = vmatprep.subr.bf16.mxu0 %v3459_v63 }
 0x883   :  { %3462 = vmatpush3.bf16.msra.mxu0 %v3459_v63 }
 0x884   :  { %3464 = vmatprep.subr.bf16.mxu0 %v3463_v2 }
 0x887   :  { %3466 = vmatpush3.bf16.msra.mxu0 %v3463_v2 }
 0x906   :  { %v1097_v42 = vpop.xlane.xlu0 %1096 }
 0x907   :  { %v1099_v43 = vmul.f32 0.015625, %v1097_v42  ;;  %v1094_v44 = vpop.xlane.xlu1 %1093  ;;  %v3491_v42 = vpack.c.bf16 %v1261_v41, %v1260_v40  ;;  %v2938_v40 = vld [vmem:[%s4560_s1 + $0xb0] sm:$0xff] }
 0x908   :  { %v1098_v45 = vmul.f32 0.015625, %v1094_v44  ;;  %v1263_v44 = vld [vmem:[%s4538_s13 + $0x78] sm:$0xff] }
 0x909   :  { %v1101_v46 = vsub.f32 %v1089_v38, %v1099_v43  ;;  %v1259_v38 = vld [vmem:[%s4538_s13 + $0x58] sm:$0xff]  ;;  %v1262_v43 = vld [vmem:[%s4538_s13 + $0x70] sm:$0xff] }
 0x90a   :  { %v1100_v47 = vsub.f32 %v1088_v39, %v1098_v45  ;;  %v3487_v39 = vpack.c.bf16 %v1259_v38, %v1258_v36  ;;  %v3495_v45 = vpack.c.bf16 %v1263_v44, %v1262_v43  ;;  %v2937_v36 = vld [vmem:[%s4560_s1 + $0xa8] sm:$0xff]  ;;  %v2943_v43 = vld [vmem:[%s4560_s1 + $0xd8] sm:$0xff] }
 0x90b   :  { %v1103_v48 = vmul.f32 %v1101_v46, %v1101_v46  ;;  %v3503_v38 = vpack.c.bf16 %v2939_v37, %v2937_v36 }
 0x90c   :  { %v1102_v49 = vmul.f32 %v1100_v47, %v1100_v47  ;;  %3488 = vmatprep.subr.bf16.mxu1 %v3487_v39 }
 0x90d   :  { %v1107_v50 = vsel %vm76_vm0, %v1103_v48, 0.0  ;;  %3490 = vmatpush3.bf16.msra.mxu1 %v3487_v39  ;;  %v2936_v39 = vld [vmem:[%s4560_s1 + $0xa0] sm:$0xff] }
 0x90e   :  { %1108 = vadd.xlane.f32.xlu1 %v1107_v50  ;;  %v1104_v54 = vsel %vm76_vm0, %v1102_v49, 0.0  ;;  %3492 = vmatprep.subr.bf16.mxu1 %v3491_v42  ;;  %v3505_v41 = vpack.c.bf16 %v2938_v40, %v2936_v39 }
 0x90f   :  { %1105 = vadd.xlane.f32.xlu0 %v1104_v54 }
 0x911   :  { %3494 = vmatpush3.bf16.msra.mxu1 %v3491_v42  ;;  %v2941_v42 = vld [vmem:[%s4560_s1 + $0xc8] sm:$0xff] }
 0x912   :  { %3496 = vmatprep.subr.bf16.mxu1 %v3495_v45  ;;  %v3507_v44 = vpack.c.bf16 %v2943_v43, %v2941_v42 }
 0x915   :  { %3498 = vmatpush3.bf16.msra.mxu1 %v3495_v45  ;;  %v2940_v45 = vld [vmem:[%s4560_s1 + $0xc0] sm:$0xff] }
 0x916   :  { %3280 = vmatprep.subr.mxu1 %v3729_v33 }
 0x99b   :  { %v1109_v3 = vpop.xlane.xlu1 %1108 }
 0x99c   :  { %v1111_v5 = vmul.f32 0.015625, %v1109_v3  ;;  %v1106_v6 = vpop.xlane.xlu0 %1105 }
 0x99d   :  { %v1110_v8 = vmul.f32 0.015625, %v1106_v6 }
 0x99e   :  { %v1113_v4 = vadd.f32 1e-12, %v1111_v5 }
 0x99f   :  { %v1112_v10 = vadd.f32 1e-12, %v1110_v8 }
 0x9a0   :  { %3637 = vrsqrt.f32 %v1113_v4 }
 0x9a1   :  { %3639 = vrsqrt.f32 %v1112_v10  ;;  %v2929_v10 = vld [vmem:[%s4539_s14] ss:$0 sm:$0xff] }
 0x9aa   :  { %v3638_v11 = vpop.eup %3637 }
 0x9ab   :  { %v3640_v13 = vpop.eup %3639  ;;  %v1117_v15 = vmul.f32 %v3638_v11, %v1101_v46  ;;  %v2926_v46 = vld [vmem:[%s4537_s12] ss:$0 sm:$0xff] }
 0x9ac   :  { %v1116_v16 = vmul.f32 %v3640_v13, %v1100_v47 }
 0x9ad   :  { %v1125_v7 = vmul.f32 %v2924_v12, %v1117_v15 }
 0x9ae   :  { %v1124_v18 = vmul.f32 %v2924_v12, %v1116_v16 }
 0x9af   :  { %v4086_v20 = vadd.f32 %v2925_v17, %v1125_v7 }
 0x9b0   :  { %v4084_v19 = vadd.f32 %v2925_v17, %v1124_v18 }
 0x9b2   :  { %3227 = vmatprep.mubr.msk.f32.mxu0 %vm76_vm0, %v4084_v19 }
 0x9b3   :  { %3228 = vmatmul.mubr.msk.f32.vlgmr.msra.gmra.mrb[8].mxu0 %vm76_vm0, %v4086_v20 }
 0x9b4   :  { %1492 = vmatprep.mubr.f32.mxu0 %v3729_v33 }
 0xa86   :  { %v3229_v47 = vpop.f32.mrb[8].mxu0 }
 0xa87   :  { %v1227_v48 = vadd.f32 %v3229_v47, %v2926_v46  ;;  %v1221_v49 = vpop.f32.mrb[9].mxu0 }
 0xa88   :  { %v1222_v50 = vadd.f32 %v2926_v46, %v1221_v49  ;;  %v2942_v46 = vld [vmem:[%s4560_s1 + $0xd0] sm:$0xff]  ;;  %v2947_v49 = vld [vmem:[%s4560_s1 + $0xf8] sm:$0xff] }
 0xa89   :  { %v1231_v54 = vmul.f32 %v1227_v48, %v1227_v48  ;;  %v3509_v47 = vpack.c.bf16 %v2942_v46, %v2940_v45 }
 0xa8a   :  { %v1230_v51 = vmul.f32 %v1222_v50, %v1222_v50 }
 0xa8b   :  { %v1233_v52 = vmul.f32 %v1231_v54, %v1227_v48  ;;  %v2944_v54 = vld [vmem:[%s4560_s1 + $0xe0] sm:$0xff] }
 0xa8c   :  { %v1232_v53 = vmul.f32 %v1230_v51, %v1222_v50  ;;  %v2946_v51 = vld [vmem:[%s4560_s1 + $0xf0] sm:$0xff] }
 0xa8d   :  { %v1235_v55 = vmul.f32 0.044715, %v1233_v52  ;;  %v3513_v52 = vpack.c.bf16 %v2946_v51, %v2944_v54 }
 0xa8e   :  { %v1234_v58 = vmul.f32 0.044715, %v1232_v53 }
 0xa8f   :  { %v1237_v59 = vadd.f32 %v1235_v55, %v1227_v48 }
 0xa90   :  { %v1236_v60 = vadd.f32 %v1234_v58, %v1222_v50 }
 0xa91   :  { %v1239_v62 = vmul.f32 0.7978846, %v1237_v59 }
 0xa92   :  { %v1238_v63 = vmul.f32 0.7978846, %v1236_v60 }
 0xa93   :  { %3641 = vtanh.f32 %v1239_v62 }
 0xa94   :  { %3643 = vtanh.f32 %v1238_v63 }
 0xa9d   :  { %v3642_v0 = vpop.eup %3641 }
 0xa9e   :  { %v3644_v1 = vpop.eup %3643  ;;  %v1243_v2 = vadd.f32 1.0, %v3642_v0 }
 0xa9f   :  { %v1242_v3 = vadd.f32 1.0, %v3644_v1  ;;  %v2930_v1 = vld [vmem:[%s4540_s15] ss:$0 sm:$0xff] }
 0xaa0   :  { %v1245_v5 = vmul.f32 0.5, %v1243_v2 }
 0xaa1   :  { %v1244_v6 = vmul.f32 0.5, %v1242_v3 }
 0xaa2   :  { %v1247_v4 = vmul.f32 %v1245_v5, %v1227_v48  ;;  %v2945_v48 = vld [vmem:[%s4560_s1 + $0xe8] sm:$0xff]  ;;  %v2931_v5 = vld [vmem:[%s4541_s16] ss:$0 sm:$0xff] }
 0xaa3   :  { %v1246_v8 = vmul.f32 %v1244_v6, %v1222_v50  ;;  %v3511_v50 = vpack.c.bf16 %v2947_v49, %v2945_v48 }
 0xaa5   :  { %3262 = vmatprep.mubr.f32.mxu1 %v1246_v8 }
 0xaa6   :  { %3263 = vmatmul.mubr.f32.vlgmr.msra.gmra.mrb[14].mxu1 %v1247_v4 }
 0xaa7   :  { %3282 = vmatprep.mubr.msk.f32.mxu1 %vm3730_vm1, %v3729_v33 }
 0xb79   :  { %v3264_v11 = vpop.f32.mrb[14].mxu1 }
 0xb7a   :  { %v1343_v12 = vadd.f32 %v3264_v11, %v2929_v10  ;;  %v1337_v13 = vpop.f32.mrb[15].mxu1  ;;  %v2948_v11 = vld [vmem:[%s4563_s30 + $0x2] sm:$0x3] }
 0xb7b   :  { %v1338_v15 = vadd.f32 %v2929_v10, %v1337_v13  ;;  %v1419_v13 = vrot.slane %v2948_v11, %v146_v61 }
 0xb7c   :  { %v1347_v16 = vadd.f32 %v1343_v12, %v4086_v20  ;;  %v1415_v12 = vrot.slane %v2948_v11, %v142_v57 }
 0xb7d   :  { %v1346_v17 = vadd.f32 %v1338_v15, %v4084_v19  ;;  %v2933_v19 = vld [vmem:[%s4560_s1 + $0x88] sm:$0xff] }
 0xb7e   :  { %v1353_v7 = vsel %vm76_vm0, %v1347_v16, 0.0  ;;  %v3499_v31 = vpack.c.bf16 %v2935_v30, %v2933_v19 }
 0xb7f   :  { %1354 = vadd.xlane.f32.xlu1 %v1353_v7  ;;  %v1350_v18 = vsel %vm76_vm0, %v1346_v17, 0.0 }
 0xb80   :  { %1351 = vadd.xlane.f32.xlu0 %v1350_v18  ;;  %3500 = vmatprep.subr.bf16.mxu0 %v3499_v31 }
 0xb81   :  { %3502 = vmatpush1.bf16.msra.mxu0 %v3501_v35 }
 0xb82   :  { %3504 = vmatprep.subr.bf16.mxu0 %v3503_v38 }
 0xb85   :  { %3506 = vmatpush1.bf16.msra.mxu0 %v3505_v41 }
 0xb86   :  { %3508 = vmatprep.subr.bf16.mxu0 %v3507_v44 }
 0xb89   :  { %3510 = vmatpush1.bf16.msra.mxu0 %v3509_v47 }
 0xb8a   :  { %3512 = vmatprep.subr.bf16.mxu0 %v3511_v50 }
 0xb8d   :  { %3514 = vmatpush1.bf16.msra.mxu0 %v3513_v52 }
 0xb8e   :  { %3265 = vmatprep.subr.mxu0 %v3729_v33 }
 0xc0c   :  { %v1355_v21 = vpop.xlane.xlu1 %1354 }
 0xc0d   :  { %v1357_v22 = vmul.f32 0.015625, %v1355_v21  ;;  %v1352_v23 = vpop.xlane.xlu0 %1351 }
 0xc0e   :  { %v1356_v24 = vmul.f32 0.015625, %v1352_v23 }
 0xc0f   :  { %v1359_v25 = vsub.f32 %v1347_v16, %v1357_v22 }
 0xc10   :  { %v1358_v26 = vsub.f32 %v1346_v17, %v1356_v24 }
 0xc11   :  { %v1361_v27 = vmul.f32 %v1359_v25, %v1359_v25 }
 0xc12   :  { %v1360_v28 = vmul.f32 %v1358_v26, %v1358_v26 }
 0xc13   :  { %v1365_v29 = vsel %vm76_vm0, %v1361_v27, 0.0 }
 0xc14   :  { %1366 = vadd.xlane.f32.xlu1 %v1365_v29  ;;  %v1362_v20 = vsel %vm76_vm0, %v1360_v28, 0.0 }
 0xc15   :  { %1363 = vadd.xlane.f32.xlu0 %v1362_v20 }
 0xca1   :  { %v1367_v53 = vpop.xlane.xlu1 %1366 }
 0xca2   :  { %v1369_v55 = vmul.f32 0.015625, %v1367_v53  ;;  %v1364_v58 = vpop.xlane.xlu0 %1363 }
 0xca3   :  { %v1368_v59 = vmul.f32 0.015625, %v1364_v58 }
 0xca4   :  { %v1371_v60 = vadd.f32 1e-12, %v1369_v55 }
 0xca5   :  { %v1370_v62 = vadd.f32 1e-12, %v1368_v59 }
 0xca6   :  { %3645 = vrsqrt.f32 %v1371_v60 }
 0xca7   :  { %3647 = vrsqrt.f32 %v1370_v62 }
 0xcb0   :  { %v3646_v63 = vpop.eup %3645 }
 0xcb1   :  { %v3648_v0 = vpop.eup %3647  ;;  %v1375_v3 = vmul.f32 %v3646_v63, %v1359_v25 }
 0xcb2   :  { %v1374_v2 = vmul.f32 %v3648_v0, %v1358_v26 }
 0xcb3   :  { %v1383_v4 = vmul.f32 %v2930_v1, %v1375_v3 }
 0xcb4   :  { %v1382_v6 = vmul.f32 %v2930_v1, %v1374_v2 }
 0xcb5   :  { %v4216_v10 = vadd.f32 %v2931_v5, %v1383_v4 }
 0xcb6   :  { %v4211_v8 = vadd.f32 %v2931_v5, %v1382_v6 }
 0xcb8   :  { %2949 = vmatmul.mubr.msk.f32.vlgmr.msra.gmra.mrb[10].mxu0 %vm76_vm0, %v4211_v8 }
 0xcb9   :  { %1498 = vmatprep.mubr.f32.mxu0 %v3729_v33 }
 0xcbc   :  { %2950 = vmatmul.mubr.msk.f32.gmra.mrb[12].mxu0 %vm76_vm0, %v4216_v10 }
 0xcbd   :  { %3267 = vmatprep.mubr.msk.f32.mxu0 %vm3730_vm1, %v3729_v33 }
 0xd8b   :  { %v1494_v15 = vpop.f32.mrb[10].mxu0 }
 0xd8c   :  { %v1495_v16 = vadd.f32 %v1494_v15, %v1415_v12  ;;  %v1496_v17 = vpop.f32.mrb[11].mxu0 }
 0xd8d   :  { %v4229_v7 = vadd.f32 %v1496_v17, %v1419_v13 }
 0xd8e   :  { %1517 = vrot.lane.b32.xlu0 %v1495_v16, %s3731_s4 }
 0xd8f   :  { %v1500_v18 = vpop.f32.mrb[12].mxu0 }
 0xd90   :  { %v1501_v21 = vadd.f32 %v1500_v18, %v1415_v12  ;;  %v1502_v22 = vpop.f32.mrb[13].mxu0 }
 0xd91   :  { %v4232_v23 = vadd.f32 %v1502_v22, %v1419_v13  ;;  %v2955_v22 = vld [vmem:[%s4532_s7 + $0x60] sm:$0xff] }
 0xd92   :  { %1594 = vrot.lane.b32.xlu1 %v1501_v21, %s3731_s4 }
 0xd93   :  { %3281 = vmatpush3.msra.mxu1 %v4232_v23 }
 0xd94   :  { %3290 = vmatprep.subr.mxu1 %v3729_v33 }
 0xe00   :  { %v1518_v56 = vpop.permute.xlu0 %1517 }
 0xe01   :  { %3266 = vmatpush3.xpose.msk.msra.mxu0 %vm245_vm2, %v1518_v56 }
 0xe02   :  { %3270 = vmatprep.subr.mxu0 %v3729_v33 }
 0xe04   :  { %v1595_v57 = vpop.permute.xlu1 %1594  ;;  %3268 = vmatmul.mubr.msk.f32.vlgmr.msra.gmra.mrb[14].mxu0 %vm245_vm2, %v1495_v16 }
 0xe05   :  { %3271 = vmatpush3.xpose.msk.msra.mxu0 %vm245_vm2, %v1595_v57  ;;  %3272 = vmatprep.mubr.msk.f32.mxu0 %vm3730_vm1, %v3729_v33 }
 0xe06   :  { %3275 = vmatprep.subr.mxu0 %v3729_v33 }
 0xe08   :  { %3273 = vmatmul.mubr.msk.f32.vlgmr.msra.gmra.mrb[16].mxu0 %vm245_vm2, %v1501_v21 }
 0xe09   :  { %3276 = vmatpush3.msra.mxu0 %v4229_v7  ;;  %3277 = vmatprep.mubr.msk.f32.mxu0 %vm3730_vm1, %v3729_v33 }
 0xe0a   :  { %3285 = vmatprep.subr.mxu0 %v3729_v33 }
 0xed7   :  { %v1589_v61 = vpop.f32.mrb[14].mxu0 }
 0xed8   :  { %v1670_v24 = vmul.f32 0.17677669, %v1589_v61  ;;  %v3269_v25 = vpop.f32.mrb[15].mxu0 }
 0xeda   :  { %v1672_v26 = vadd.f32 %v3964_v9, %v1670_v24 }
 0xedb   :  { %v1666_v27 = vpop.f32.mrb[16].mxu0 }
 0xedc   :  { %v1671_v28 = vmul.f32 0.17677669, %v1666_v27  ;;  %v3274_v29 = vpop.f32.mrb[17].mxu0  ;;  %v1674_v20 = vsel %vm413_vm3, %v1672_v26, -inf  ;;  %v2957_v27 = vld [vmem:[%s4532_s7 + $0x70] sm:$0xff] }
 0xedd   :  { %1675 = vmax.xlane.f32.xlu1 %v1674_v20  ;;  %v2951_v20 = vld [vmem:[%s4532_s7 + $0x40] sm:$0xff] }
 0xede   :  { %v1673_v19 = vadd.f32 %v3970_v14, %v1671_v28  ;;  %v2958_v28 = vld [vmem:[%s4532_s7 + $0x78] sm:$0xff] }
 0xedf   :  { %v3519_v29 = vpack.c.bf16 %v2958_v28, %v2957_v27  ;;  %v2995_v27 = vld [vmem:[%s4538_s13 + $0x90] sm:$0xff]  ;;  %v2996_v28 = vld [vmem:[%s4538_s13 + $0x98] sm:$0xff] }
 0xee0   :  { %v1677_v30 = vsel %vm413_vm3, %v1673_v19, -inf }
 0xee1   :  { %1678 = vmax.xlane.f32.xlu0 %v1677_v30 }
 0xeee   :  { %1922 = vrot.lane.b32.xlu1 %v1501_v21, %s3732_s25 }
 0xef2   :  { %1842 = vrot.lane.b32.xlu1 %v1495_v16, %s3733_s26 }
 0xf6a   :  { %v1676_v31 = vpop.xlane.xlu1 %1675 }
 0xf6b   :  { %v1680_v32 = vsub.f32 %v1672_v26, %v1676_v31 }
 0xf6d   :  { %v1682_v34 = vmul.f32 1.442695, %v1680_v32  ;;  %v2953_v32 = vld [vmem:[%s4532_s7 + $0x50] sm:$0xff] }
 0xf6e   :  { %v1679_v35 = vpop.xlane.xlu0 %1678  ;;  %v1923_v42 = vpop.permute.xlu1 %1922 }
 0xf6f   :  { %3649 = vpow2.f32 %v1682_v34  ;;  %v1681_v36 = vsub.f32 %v1673_v19, %v1679_v35  ;;  %v2952_v19 = vld [vmem:[%s4532_s7 + $0x48] sm:$0xff]  ;;  %v2954_v34 = vld [vmem:[%s4532_s7 + $0x58] sm:$0xff] }
 0xf70   :  { %v3523_v30 = vpack.c.bf16 %v2952_v19, %v2951_v20  ;;  %v2997_v20 = vld [vmem:[%s4538_s13 + $0xa0] sm:$0xff]  ;;  %v2998_v19 = vld [vmem:[%s4538_s13 + $0xa8] sm:$0xff] }
 0xf71   :  { %v1684_v37 = vmul.f32 1.442695, %v1681_v36  ;;  %v3527_v36 = vpack.c.bf16 %v2954_v34, %v2953_v32  ;;  %v3000_v32 = vld [vmem:[%s4538_s13 + $0xb8] sm:$0xff] }
 0xf72   :  { %v1843_v43 = vpop.permute.xlu1 %1842 }
 0xf73   :  { %3651 = vpow2.f32 %v1684_v37 }
 0xf79   :  { %v3650_v38 = vpop.eup %3649 }
 0xf7a   :  { %v1686_v39 = vsel %vm413_vm3, %v3650_v38, 0.0 }
 0xf7b   :  { %1687 = vadd.xlane.f32.xlu0 %v1686_v39  ;;  %v2976_v39 = vld [vmem:[%s4533_s8 + $0x1] ss:$0 sm:$0xff] }
 0xf7d   :  { %v3652_v40 = vpop.eup %3651 }
 0xf7e   :  { %v1689_v41 = vsel %vm413_vm3, %v3652_v40, 0.0 }
 0xf7f   :  { %1690 = vadd.xlane.f32.xlu1 %v1689_v41 }
 0xf90   :  { %1920 = vrot.lane.b32.xlu1 %v1501_v21, %s3733_s26 }
 0xf91   :  { %1844 = vrot.lane.b32.xlu0 %v1495_v16, %s3732_s25 }
0x1008   :  { %v1688_v44 = vpop.xlane.xlu0 %1687 }
0x1009   :  { %3653 = vrcp.f32 %v1688_v44 }
0x100c   :  { %v1691_v45 = vpop.xlane.xlu1 %1690  ;;  %v1845_v48 = vpop.permute.xlu0 %1844 }
0x100d   :  { %3655 = vrcp.f32 %v1691_v45 }
0x1010   :  { %v1921_v54 = vpop.permute.xlu1 %1920 }
0x1013   :  { %v3654_v46 = vpop.eup %3653 }
0x1014   :  { %v1694_v47 = vmul.f32 %v3654_v46, %v3650_v38 }
0x1016   :  { %3278 = vmatmul.mubr.msk.f32.vlgmr.msra.gmra.mrb[18].mxu0 %vm413_vm3, %v1694_v47 }
0x1017   :  { %v3656_v49 = vpop.eup %3655  ;;  %3286 = vmatpush3.xpose.msk.msra.mxu0 %vm245_vm2, %v1845_v48  ;;  %3287 = vmatprep.mubr.msk.f32.mxu0 %vm3730_vm1, %v3729_v33 }
0x1018   :  { %v1695_v50 = vmul.f32 %v3656_v49, %v3652_v40  ;;  %3295 = vmatprep.subr.mxu0 %v3729_v33 }
0x101a   :  { %3283 = vmatmul.mubr.msk.f32.vlgmr.msra.gmra.mrb[16].mxu1 %vm413_vm3, %v1695_v50  ;;  %3288 = vmatmul.mubr.msk.f32.vlgmr.msra.gmra.mrb[20].mxu0 %vm245_vm2, %v1843_v43 }
0x101b   :  { %3291 = vmatpush3.xpose.msk.msra.mxu1 %vm245_vm2, %v1923_v42  ;;  %3292 = vmatprep.mubr.msk.f32.mxu1 %vm3730_vm1, %v3729_v33 }
0x101c   :  { %3300 = vmatprep.subr.mxu1 %v3729_v33  ;;  %3297 = vmatprep.mubr.msk.f32.mxu0 %vm3730_vm1, %v3729_v33 }
0x101e   :  { %3293 = vmatmul.mubr.msk.f32.vlgmr.msra.gmra.mrb[18].mxu1 %vm245_vm2, %v1921_v54 }
0x101f   :  { %3302 = vmatprep.mubr.msk.f32.mxu1 %vm3730_vm1, %v3729_v33 }
0x10e9   :  { %v4275_v51 = vpop.f32.mrb[18].mxu0 }
0x10ea   :  { %v3279_v52 = vpop.f32.mrb[19].mxu0 }
0x10ed   :  { %v4277_v53 = vpop.f32.mrb[16].mxu1  ;;  %v1916_v55 = vpop.f32.mrb[20].mxu0 }
0x10ee   :  { %v1998_v58 = vmul.f32 0.17677669, %v1916_v55  ;;  %v3284_v59 = vpop.f32.mrb[17].mxu1  ;;  %v3289_v60 = vpop.f32.mrb[21].mxu0 }
0x10ef   :  { %v2982_v59 = vld [vmem:[%s4536_s11 + $0x48] sm:$0xff] }
0x10f0   :  { %v2000_v62 = vadd.f32 %v3964_v9, %v1998_v58 }
0x10f1   :  { %v1994_v63 = vpop.f32.mrb[18].mxu1 }
0x10f2   :  { %v1999_v0 = vmul.f32 0.17677669, %v1994_v63  ;;  %v3294_v1 = vpop.f32.mrb[19].mxu1  ;;  %v2002_v2 = vsel %vm413_vm3, %v2000_v62, -inf  ;;  %v2984_v63 = vld [vmem:[%s4536_s11 + $0x58] sm:$0xff] }
0x10f3   :  { %2003 = vmax.xlane.f32.xlu0 %v2002_v2  ;;  %v2985_v1 = vld [vmem:[%s4536_s11 + $0x60] sm:$0xff]  ;;  %v2986_v2 = vld [vmem:[%s4536_s11 + $0x68] sm:$0xff] }
0x10f4   :  { %v2001_v3 = vadd.f32 %v3970_v14, %v1999_v0 }
0x10f6   :  { %v2005_v5 = vsel %vm413_vm3, %v2001_v3, -inf }
0x10f7   :  { %2006 = vmax.xlane.f32.xlu1 %v2005_v5  ;;  %v2987_v5 = vld [vmem:[%s4536_s11 + $0x70] sm:$0xff] }
0x1108   :  { %2102 = vrot.lane.b32.xlu1 %v4232_v23, %s3733_s26  ;;  %v2956_v23 = vld [vmem:[%s4532_s7 + $0x68] sm:$0xff] }
0x1109   :  { %v3515_v57 = vpack.c.bf16 %v2956_v23, %v2955_v22  ;;  %v2980_v23 = vld [vmem:[%s4535_s10 + $0x1] ss:$0 sm:$0xff] }
0x1180   :  { %v2004_v6 = vpop.xlane.xlu0 %2003 }
0x1181   :  { %v2008_v4 = vsub.f32 %v2000_v62, %v2004_v6  ;;  %v2983_v62 = vld [vmem:[%s4536_s11 + $0x50] sm:$0xff]  ;;  %v2988_v6 = vld [vmem:[%s4536_s11 + $0x78] sm:$0xff] }
0x1182   :  { %v3535_v0 = vpack.c.bf16 %v2984_v63, %v2983_v62 }
0x1183   :  { %v2010_v11 = vmul.f32 1.442695, %v2008_v4  ;;  %v3543_v4 = vpack.c.bf16 %v2988_v6, %v2987_v5 }
0x1184   :  { %v2007_v12 = vpop.xlane.xlu1 %2006 }
0x1185   :  { %3657 = vpow2.f32 %v2010_v11  ;;  %v2009_v9 = vsub.f32 %v2001_v3, %v2007_v12  ;;  %v3539_v3 = vpack.c.bf16 %v2986_v2, %v2985_v1 }
0x1187   :  { %v2012_v13 = vmul.f32 1.442695, %v2009_v9 }
0x1188   :  { %v2103_v15 = vpop.permute.xlu1 %2102 }
0x1189   :  { %3659 = vpow2.f32 %v2012_v13  ;;  %3301 = vmatpush3.msra.mxu1 %v2103_v15 }
0x118f   :  { %v3658_v16 = vpop.eup %3657 }
0x1190   :  { %v2014_v17 = vsel %vm413_vm3, %v3658_v16, 0.0 }
0x1191   :  { %2015 = vadd.xlane.f32.xlu0 %v2014_v17 }
0x1193   :  { %v3660_v14 = vpop.eup %3659 }
0x1194   :  { %v2017_v18 = vsel %vm413_vm3, %v3660_v14, 0.0 }
0x1195   :  { %2018 = vadd.xlane.f32.xlu0 %v2017_v18 }
0x11ab   :  { %2025 = vrot.lane.b32.xlu0 %v4229_v7, %s3733_s26 }
0x121e   :  { %v2016_v21 = vpop.xlane.xlu0 %2015 }
0x121f   :  { %3661 = vrcp.f32 %v2016_v21 }
0x1222   :  { %v2019_v56 = vpop.xlane.xlu0 %2018 }
0x1223   :  { %3663 = vrcp.f32 %v2019_v56 }
0x1226   :  { %v2026_v61 = vpop.permute.xlu0 %2025 }
0x1227   :  { %3296 = vmatpush3.msra.mxu0 %v2026_v61 }
0x1228   :  { %3516 = vmatprep.subr.bf16.mxu0 %v3515_v57 }
0x1229   :  { %v3662_v24 = vpop.eup %3661 }
0x122a   :  { %v2022_v25 = vmul.f32 %v3662_v24, %v3658_v16 }
0x122c   :  { %3298 = vmatmul.mubr.msk.f32.vlgmr.msra.gmra.mrb[22].mxu0 %vm413_vm3, %v2022_v25  ;;  %v2993_v25 = vld [vmem:[%s4538_s13 + $0x80] sm:$0xff] }
0x122d   :  { %v3664_v7 = vpop.eup %3663  ;;  %3518 = vmatpush3.bf16.msra.mxu0 %v3515_v57 }
0x122e   :  { %v2023_v26 = vmul.f32 %v3664_v7, %v3660_v14  ;;  %3520 = vmatprep.subr.bf16.mxu0 %v3519_v29  ;;  %v2979_v14 = vld [vmem:[%s4534_s9 + $0x1] ss:$0 sm:$0xff]  ;;  %v2994_v7 = vld [vmem:[%s4538_s13 + $0x88] sm:$0xff] }
0x1230   :  { %3303 = vmatmul.mubr.msk.f32.vlgmr.msra.gmra.mrb[20].mxu1 %vm413_vm3, %v2023_v26  ;;  %v3547_v26 = vpack.c.bf16 %v2994_v7, %v2993_v25 }
0x1231   :  { %3522 = vmatpush3.bf16.msra.mxu0 %v3519_v29  ;;  %v3551_v29 = vpack.c.bf16 %v2996_v28, %v2995_v27  ;;  %v2661_v28 = vld [vmem:[%s4542_s17 + $0x8] sm:$0xff] }
0x1232   :  { %3524 = vmatprep.subr.bf16.mxu0 %v3523_v30 }
0x12ff   :  { %v2097_v31 = vpop.f32.mrb[22].mxu0 }
0x1300   :  { %v3299_v35 = vpop.f32.mrb[23].mxu0  ;;  %3313 = vmatprep.mubr.msk.f32.mxu0 %vm245_vm2, %v2097_v31  ;;  %v2999_v31 = vld [vmem:[%s4538_s13 + $0xb0] sm:$0xff] }
0x1301   :  { %v3559_v34 = vpack.c.bf16 %v3000_v32, %v2999_v31  ;;  %v3001_v35 = vld [vmem:[%s4538_s13 + $0xc0] sm:$0xff] }
0x1302   :  { %v2664_v32 = vld [vmem:[%s4542_s17 + $0x20] sm:$0xff] }
0x1303   :  { %v2174_v37 = vpop.f32.mrb[20].mxu1 }
0x1304   :  { %v3304_v38 = vpop.f32.mrb[21].mxu1  ;;  %3314 = vmatmul.mubr.msk.f32.vlgmr.msra.gmra.mrb[24].mxu0 %vm245_vm2, %v2174_v37  ;;  %v3003_v37 = vld [vmem:[%s4538_s13 + $0xd0] sm:$0xff] }
0x1305   :  { %3526 = vmatpush3.bf16.msra.mxu0 %v3523_v30  ;;  %3324 = vmatprep.mubr.msk.f32.mxu0 %vm245_vm2, %v4275_v51  ;;  %v3555_v30 = vpack.c.bf16 %v2998_v19, %v2997_v20  ;;  %v3734_v20 = vmov 0.0|0.0   ;;  %v2662_v19 = vld [vmem:[%s4542_s17 + $0x10] sm:$0xff] }
0x1306   :  { %3528 = vmatprep.subr.bf16.mxu0 %v3527_v36 }
0x1309   :  { %3530 = vmatpush3.bf16.msra.mxu0 %v3527_v36  ;;  %v3002_v36 = vld [vmem:[%s4538_s13 + $0xc8] sm:$0xff] }
0x130a   :  { %3548 = vmatprep.subr.bf16.mxu0 %v3547_v26  ;;  %v3563_v38 = vpack.c.bf16 %v3002_v36, %v3001_v35  ;;  %v2666_v36 = vld [vmem:[%s4542_s17 + $0x30] sm:$0xff] }
0x130c   :  { %3325 = vmatmul.mubr.msk.f32.vlgmr.msra.gmra.mrb[24].mxu0 %vm245_vm2, %v4277_v53 }
0x130d   :  { %3550 = vmatpush3.bf16.msra.mxu0 %v3547_v26 }
0x130e   :  { %3552 = vmatprep.subr.bf16.mxu0 %v3551_v29 }
0x1311   :  { %3554 = vmatpush3.bf16.msra.mxu0 %v3551_v29 }
0x1312   :  { %3556 = vmatprep.subr.bf16.mxu0 %v3555_v30 }
0x1315   :  { %3558 = vmatpush3.bf16.msra.mxu0 %v3555_v30  ;;  %v2663_v30 = vld [vmem:[%s4542_s17 + $0x18] sm:$0xff] }
0x1316   :  { %3560 = vmatprep.subr.bf16.mxu0 %v3559_v34  ;;  %v3583_v31 = vpack.c.bf16 %v2663_v30, %v2662_v19 }
0x1319   :  { %3562 = vmatpush3.bf16.msra.mxu0 %v3559_v34  ;;  %v2665_v34 = vld [vmem:[%s4542_s17 + $0x28] sm:$0xff] }
0x131a   :  { %3564 = vmatprep.subr.bf16.mxu0 %v3563_v38  ;;  %v3586_v35 = vpack.c.bf16 %v2665_v34, %v2664_v32 }
0x131d   :  { %3566 = vmatpush3.bf16.msra.mxu0 %v3563_v38 }
0x13df   :  { %v3326_v40 = vpop.f32.mrb[24].mxu0 }
0x13e0   :  { %v2347_v41 = vadd.f32 %v3326_v40, %v2976_v39  ;;  %v2331_v42 = vpop.f32.mrb[25].mxu0 }
0x13e1   :  { %v2346_v43 = vadd.f32 %v2976_v39, %v2331_v42  ;;  %v3004_v39 = vld [vmem:[%s4538_s13 + $0xd8] sm:$0xff]  ;;  %v3006_v42 = vld [vmem:[%s4538_s13 + $0xe8] sm:$0xff] }
0x13e2   :  { %v2349_v44 = vadd.f32 %v2347_v41, %v4216_v10  ;;  %v3567_v40 = vpack.c.bf16 %v3004_v39, %v3003_v37  ;;  %v3005_v41 = vld [vmem:[%s4538_s13 + $0xe0] sm:$0xff]  ;;  %v2667_v37 = vld [vmem:[%s4542_s17 + $0x38] sm:$0xff] }
0x13e3   :  { %v2348_v45 = vadd.f32 %v2346_v43, %v4211_v8  ;;  %v2981_v8 = vld [vmem:[%s4536_s11 + $0x40] sm:$0xff]  ;;  %v3571_v43 = vpack.c.bf16 %v3006_v42, %v3005_v41  ;;  %v3589_v38 = vpack.c.bf16 %v2667_v37, %v2666_v36 }
0x13e4   :  { %v2357_v46 = vsel %vm76_vm0, %v2349_v44, 0.0  ;;  %v3531_v60 = vpack.c.bf16 %v2982_v59, %v2981_v8  ;;  %3568 = vmatprep.subr.bf16.mxu0 %v3567_v40 }
0x13e5   :  { %2358 = vadd.xlane.f32.xlu0 %v2357_v46  ;;  %v2354_v47 = vsel %vm76_vm0, %v2348_v45, 0.0  ;;  %3570 = vmatpush3.bf16.msra.mxu0 %v3567_v40 }
0x13e6   :  { %2355 = vadd.xlane.f32.xlu1 %v2354_v47  ;;  %3532 = vmatprep.subr.bf16.mxu1 %v3531_v60  ;;  %v2990_v47 = vld [vmem:[%s4537_s12 + $0x1] ss:$0 sm:$0xff] }
0x13e7   :  { %3534 = vmatpush3.bf16.msra.mxu1 %v3531_v60  ;;  %3572 = vmatprep.subr.bf16.mxu0 %v3571_v43 }
0x13e8   :  { %3536 = vmatprep.subr.bf16.mxu1 %v3535_v0 }
0x13e9   :  { %3574 = vmatpush3.bf16.msra.mxu0 %v3571_v43 }
0x13eb   :  { %3538 = vmatpush3.bf16.msra.mxu1 %v3535_v0 }
0x13ec   :  { %3540 = vmatprep.subr.bf16.mxu1 %v3539_v3 }
0x13ef   :  { %3542 = vmatpush3.bf16.msra.mxu1 %v3539_v3 }
0x13f0   :  { %3544 = vmatprep.subr.bf16.mxu1 %v3543_v4 }
0x13f3   :  { %3546 = vmatpush3.bf16.msra.mxu1 %v3543_v4 }
0x13f4   :  { %3579 = vmatprep.subr.bf16.mxu1 %v3734_v20 }
0x1472   :  { %v2359_v48 = vpop.xlane.xlu0 %2358 }
0x1473   :  { %v2361_v49 = vmul.f32 0.015625, %v2359_v48  ;;  %v2356_v50 = vpop.xlane.xlu1 %2355 }
0x1474   :  { %v2360_v54 = vmul.f32 0.015625, %v2356_v50 }
0x1475   :  { %v2363_v51 = vsub.f32 %v2349_v44, %v2361_v49  ;;  %v3007_v44 = vld [vmem:[%s4538_s13 + $0xf0] sm:$0xff] }
0x1476   :  { %v2362_v52 = vsub.f32 %v2348_v45, %v2360_v54  ;;  %v3008_v45 = vld [vmem:[%s4538_s13 + $0xf8] sm:$0xff] }
0x1477   :  { %v2365_v53 = vmul.f32 %v2363_v51, %v2363_v51  ;;  %v3575_v46 = vpack.c.bf16 %v3008_v45, %v3007_v44 }
0x1478   :  { %v2364_v55 = vmul.f32 %v2362_v52, %v2362_v52 }
0x1479   :  { %v2369_v58 = vsel %vm76_vm0, %v2365_v53, 0.0  ;;  %3576 = vmatprep.subr.bf16.mxu0 %v3575_v46 }
0x147a   :  { %2370 = vadd.xlane.f32.xlu1 %v2369_v58  ;;  %v2366_v10 = vsel %vm76_vm0, %v2364_v55, 0.0  ;;  %3578 = vmatpush3.bf16.msra.mxu0 %v3575_v46  ;;  %v3013_v46 = vld [vmem:[%s4540_s15 + $0x1] ss:$0 sm:$0xff] }
0x147b   :  { %2367 = vadd.xlane.f32.xlu0 %v2366_v10 }
0x1507   :  { %v2371_v11 = vpop.xlane.xlu1 %2370 }
0x1508   :  { %v2373_v12 = vmul.f32 0.015625, %v2371_v11  ;;  %v2368_v9 = vpop.xlane.xlu0 %2367  ;;  %v3010_v11 = vld [vmem:[%s4539_s14 + $0x1] ss:$0 sm:$0xff] }
0x1509   :  { %v2372_v13 = vmul.f32 0.015625, %v2368_v9 }
0x150a   :  { %v2375_v15 = vadd.f32 1e-12, %v2373_v12 }
0x150b   :  { %v2374_v16 = vadd.f32 1e-12, %v2372_v13 }
0x150c   :  { %3665 = vrsqrt.f32 %v2375_v15 }
0x150d   :  { %3667 = vrsqrt.f32 %v2374_v16 }
0x1516   :  { %v3666_v17 = vpop.eup %3665 }
0x1517   :  { %v3668_v18 = vpop.eup %3667  ;;  %v2379_v21 = vmul.f32 %v3666_v17, %v2363_v51 }
0x1518   :  { %v2378_v22 = vmul.f32 %v3668_v18, %v2362_v52 }
0x1519   :  { %v2387_v56 = vmul.f32 %v2979_v14, %v2379_v21 }
0x151a   :  { %v2386_v57 = vmul.f32 %v2979_v14, %v2378_v22 }
0x151b   :  { %v4362_v24 = vadd.f32 %v2980_v23, %v2387_v56 }
0x151c   :  { %v4360_v61 = vadd.f32 %v2980_v23, %v2386_v57 }
0x151e   :  { %3343 = vmatprep.mubr.msk.f32.mxu1 %vm76_vm0, %v4360_v61 }
0x151f   :  { %3344 = vmatmul.mubr.msk.f32.vlgmr.msra.gmra.mrb[22].mxu1 %vm76_vm0, %v4362_v24 }
0x1520   :  { %3397 = vmatprep.mubr.msk.f32.mxu1 %vm3730_vm1, %v3729_v33 }
0x15f2   :  { %v3345_v48 = vpop.f32.mrb[22].mxu1 }
0x15f3   :  { %v2491_v49 = vadd.f32 %v3345_v48, %v2990_v47  ;;  %v2485_v50 = vpop.f32.mrb[23].mxu1 }
0x15f4   :  { %v2486_v54 = vadd.f32 %v2990_v47, %v2485_v50  ;;  %v3014_v50 = vld [vmem:[%s4541_s16 + $0x1] ss:$0 sm:$0xff] }
0x15f5   :  { %v2495_v51 = vmul.f32 %v2491_v49, %v2491_v49 }
0x15f6   :  { %v2494_v52 = vmul.f32 %v2486_v54, %v2486_v54 }
0x15f7   :  { %v2497_v53 = vmul.f32 %v2495_v51, %v2491_v49 }
0x15f8   :  { %v2496_v55 = vmul.f32 %v2494_v52, %v2486_v54  ;;  %v2753_v52 = vld [vmem:[%s4544_s19] sm:$0xff] }
0x15f9   :  { %v2499_v58 = vmul.f32 0.044715, %v2497_v53  ;;  %v2754_v53 = vld [vmem:[%s4544_s19 + $0x8] sm:$0xff] }
0x15fa   :  { %v2498_v10 = vmul.f32 0.044715, %v2496_v55 }
0x15fb   :  { %v2501_v8 = vadd.f32 %v2499_v58, %v2491_v49 }
0x15fc   :  { %v2500_v59 = vadd.f32 %v2498_v10, %v2486_v54 }
0x15fd   :  { %v2503_v60 = vmul.f32 0.7978846, %v2501_v8  ;;  %v3592_v8 = vpack.c.bf16 %v2754_v53, %v2753_v52 }
0x15fe   :  { %v2502_v62 = vmul.f32 0.7978846, %v2500_v59  ;;  %v2755_v59 = vld [vmem:[%s4544_s19 + $0x10] sm:$0xff] }
0x15ff   :  { %3669 = vtanh.f32 %v2503_v60  ;;  %v2756_v60 = vld [vmem:[%s4544_s19 + $0x18] sm:$0xff] }
0x1600   :  { %3671 = vtanh.f32 %v2502_v62 }
0x1609   :  { %v3670_v63 = vpop.eup %3669 }
0x160a   :  { %v3672_v0 = vpop.eup %3671  ;;  %v2507_v1 = vadd.f32 1.0, %v3670_v63  ;;  %v3595_v63 = vpack.c.bf16 %v2756_v60, %v2755_v59 }
0x160b   :  { %v2506_v2 = vadd.f32 1.0, %v3672_v0  ;;  %v2757_v0 = vld [vmem:[%s4544_s19 + $0x20] sm:$0xff] }
0x160c   :  { %v2509_v3 = vmul.f32 0.5, %v2507_v1  ;;  %v2758_v1 = vld [vmem:[%s4544_s19 + $0x28] sm:$0xff] }
0x160d   :  { %v2508_v5 = vmul.f32 0.5, %v2506_v2  ;;  %v3598_v2 = vpack.c.bf16 %v2758_v1, %v2757_v0 }
0x160e   :  { %v2511_v4 = vmul.f32 %v2509_v3, %v2491_v49  ;;  %v2759_v3 = vld [vmem:[%s4544_s19 + $0x30] sm:$0xff] }
0x160f   :  { %v2510_v6 = vmul.f32 %v2508_v5, %v2486_v54 }
0x1611   :  { %3378 = vmatprep.mubr.f32.mxu0 %v2510_v6  ;;  %v3015_v6 = vld [vmem:[%s4543_s18] ss:$0 sm:$0xff] }
0x1612   :  { %3379 = vmatmul.mubr.f32.vlgmr.msra.gmra.mrb[26].mxu0 %v2511_v4 }
0x16e5   :  { %v3380_v12 = vpop.f32.mrb[26].mxu0 }
0x16e6   :  { %v2609_v9 = vadd.f32 %v3380_v12, %v3010_v11  ;;  %v2603_v13 = vpop.f32.mrb[27].mxu0 }
0x16e7   :  { %v2604_v15 = vadd.f32 %v3010_v11, %v2603_v13  ;;  %v3017_v13 = vld [vmem:[%s4545_s20] ss:$0 sm:$0xff]  ;;  %s4565_s20 = sld [smem:[#allocation10_spill]] }
0x16e8   :  { %v2613_v16 = vadd.f32 %v2609_v9, %v4362_v24 }
0x16e9   :  { %v2612_v17 = vadd.f32 %v2604_v15, %v4360_v61  ;;  %v2660_v61 = vld [vmem:[%s4542_s17] sm:$0xff] }
0x16ea   :  { %v2621_v14 = vsel %vm76_vm0, %v2613_v16, 0.0  ;;  %v3580_v29 = vpack.c.bf16 %v2661_v28, %v2660_v61 }
0x16eb   :  { %2622 = vadd.xlane.f32.xlu0 %v2621_v14  ;;  %v2618_v18 = vsel %vm76_vm0, %v2612_v17, 0.0 }
0x16ec   :  { %2619 = vadd.xlane.f32.xlu1 %v2618_v18  ;;  %3581 = vmatpush3.bf16.msra.mxu1 %v3580_v29 }
0x16ed   :  { %3582 = vmatprep.subr.bf16.mxu1 %v3734_v20 }
0x16f0   :  { %3584 = vmatpush3.bf16.msra.mxu1 %v3583_v31 }
0x16f1   :  { %3585 = vmatprep.subr.bf16.mxu1 %v3734_v20 }
0x16f4   :  { %3587 = vmatpush3.bf16.msra.mxu1 %v3586_v35 }
0x16f5   :  { %3588 = vmatprep.subr.bf16.mxu1 %v3734_v20 }
0x16f8   :  { %3590 = vmatpush3.bf16.msra.mxu1 %v3589_v38 }
0x16f9   :  { %3591 = vmatprep.subr.bf16.mxu1 %v3734_v20 }
0x1778   :  { %v2623_v21 = vpop.xlane.xlu0 %2622 }
0x1779   :  { %v2625_v22 = vmul.f32 0.015625, %v2623_v21  ;;  %v2620_v23 = vpop.xlane.xlu1 %2619 }
0x177a   :  { %v2624_v56 = vmul.f32 0.015625, %v2620_v23 }
0x177b   :  { %v2627_v57 = vsub.f32 %v2613_v16, %v2625_v22 }
0x177c   :  { %v2626_v25 = vsub.f32 %v2612_v17, %v2624_v56 }
0x177d   :  { %v2629_v7 = vmul.f32 %v2627_v57, %v2627_v57 }
0x177e   :  { %v2628_v26 = vmul.f32 %v2626_v25, %v2626_v25 }
0x177f   :  { %v2633_v27 = vsel %vm76_vm0, %v2629_v7, 0.0 }
0x1780   :  { %2634 = vadd.xlane.f32.xlu0 %v2633_v27  ;;  %v2630_v24 = vsel %vm76_vm0, %v2628_v26, 0.0  ;;  %v2855_v26 = vld [vmem:[%s4565_s20] sm:$0x3] }
0x1781   :  { %2631 = vadd.xlane.f32.xlu1 %v2630_v24 }
0x180d   :  { %v2635_v39 = vpop.xlane.xlu0 %2634 }
0x180e   :  { %v2637_v40 = vmul.f32 0.015625, %v2635_v39  ;;  %v2632_v41 = vpop.xlane.xlu1 %2631 }
0x180f   :  { %v2636_v42 = vmul.f32 0.015625, %v2632_v41 }
0x1810   :  { %v2639_v43 = vadd.f32 1e-12, %v2637_v40 }
0x1811   :  { %v2638_v44 = vadd.f32 1e-12, %v2636_v42 }
0x1812   :  { %3673 = vrsqrt.f32 %v2639_v43 }
0x1813   :  { %3675 = vrsqrt.f32 %v2638_v44 }
0x181c   :  { %v3674_v45 = vpop.eup %3673 }
0x181d   :  { %v3676_v47 = vpop.eup %3675  ;;  %v2643_v48 = vmul.f32 %v3674_v45, %v2627_v57 }
0x181e   :  { %v2642_v49 = vmul.f32 %v3676_v47, %v2626_v25 }
0x181f   :  { %v2651_v54 = vmul.f32 %v3013_v46, %v2643_v48 }
0x1820   :  { %v2650_v51 = vmul.f32 %v3013_v46, %v2642_v49 }
0x1821   :  { %v2659_v55 = vadd.f32 %v3014_v50, %v2651_v54 }
0x1822   :  { %v2658_v58 = vadd.f32 %v3014_v50, %v2650_v51 }
0x1823   :  { %v2677_v10 = vrot.slane %v2659_v55, 7 }
0x1825   :  { %v2679_v62 = vsel %vm2678_vm4, %v2677_v10, %v2658_v58 }
0x1826   :  { %3398 = vmatmul.mubr.msk.f32.vlgmr.msra.gmra.mrb[24].mxu1 %vm76_vm0, %v2679_v62 }
0x1827   :  { %3593 = vmatpush3.bf16.msra.mxu1 %v3592_v8  ;;  %3416 = vmatprep.mubr.msk.f32.mxu1 %vm3730_vm1, %v3729_v33  ;;  %v2760_v33 = vld [vmem:[%s4544_s19 + $0x38] sm:$0xff] }
0x1828   :  { %3594 = vmatprep.subr.bf16.mxu1 %v3734_v20  ;;  %v3601_v5 = vpack.c.bf16 %v2760_v33, %v2759_v3 }
0x182b   :  { %3596 = vmatpush3.bf16.msra.mxu1 %v3595_v63 }
0x182c   :  { %3597 = vmatprep.subr.bf16.mxu1 %v3734_v20 }
0x182f   :  { %3599 = vmatpush3.bf16.msra.mxu1 %v3598_v2 }
0x1830   :  { %3600 = vmatprep.subr.bf16.mxu1 %v3734_v20 }
0x1833   :  { %3602 = vmatpush3.bf16.msra.mxu1 %v3601_v5 }
0x18f9   :  { %v2748_v4 = vpop.f32.mrb[24].mxu1 }
0x18fa   :  { %v2749_v11 = vadd.f32 %v3015_v6, %v2748_v4  ;;  %v3399_v12 = vpop.f32.mrb[25].mxu1 }
0x18fc   :  { %v2752_v9 = vmax.f32 %v2749_v11, 0.0 }
0x18fe   :  { %3417 = vmatmul.mubr.msk.f32.vlgmr.msra.gmra.mrb[26].mxu1 %vm76_vm0, %v2752_v9 }
0x19d1   :  { %v2837_v15 = vpop.f32.mrb[26].mxu1 }
0x19d2   :  { %v2838_v16 = vadd.f32 %v3017_v13, %v2837_v15  ;;  %v3418_v17 = vpop.f32.mrb[27].mxu1 }
0x19d4   :  { %v2843_v14 = vsel %vm2841_vm5, %v2838_v16, -inf  ;;  %2842 = vst.msk [vmem:[#allocation2] sm:$0x3] %vm2841_vm5, %v2838_v16 }
0x19d5   :  { %2844 = vmax.xlane.f32.xlu0 %v2843_v14 }
0x1a62   :  { %v2845_v18 = vpop.xlane.xlu0 %2844 }
0x1a63   :  { %v2846_v21 = vsub.f32 %v2838_v16, %v2845_v18 }
0x1a65   :  { %v2847_v22 = vmul.f32 1.442695, %v2846_v21 }
0x1a67   :  { %3677 = vpow2.f32 %v2847_v22 }
0x1a71   :  { %v3678_v23 = vpop.eup %3677 }
0x1a72   :  { %v2849_v56 = vsel %vm2841_vm5, %v3678_v23, 0.0 }
0x1a73   :  { %2850 = vadd.xlane.f32.xlu1 %v2849_v56 }
0x1b00   :  { %v2851_v57 = vpop.xlane.xlu1 %2850 }
0x1b01   :  { %3679 = vlog2.f32 %v2851_v57 }
0x1b0b   :  { %v3680_v25 = vpop.eup %3679 }
0x1b0c   :  { %v2853_v7 = vmul.f32 0.6931472, %v3680_v25 }
0x1b0e   :  { %v2854_v27 = vsub.f32 %v2846_v21, %v2853_v7 }
0x1b10   :  { %v2856_v24 = vmul.f32 %v2855_v26, %v2854_v27 }
0x1b12   :  { %v2857_v61 = vsel %vm2841_vm5, %v2856_v24, 0.0 }
0x1b13   :  { %2858 = vadd.xlane.f32.xlu0 %v2857_v61 }
0x1b14   :  { %3692 = shalt.err (!%p3689_p4)
}
0x1b15   :  { %s3693_s24 = scalar_lea.hbm %s4546_s21, 32 }
0x1b16   :  { %p3694_p5 = scmp.ne.s32.totalorder %s4546_s21, %s3693_s24  ;;  %p3697_p6 = scmp.lt.u32.totalorder %s3693_s24, %s4546_s21 }
0x1b18   :  { %p3699_p7 = pnand %p3697_p6, %p3694_p5 }
0x1b1a   :  { %3702 = shalt.err (!%p3699_p7)
}
0x1b1b   :  { %2882 = dma.vmem_to_hbm [thread:$0]  %s2880_s23, 32, %s4546_s21, [#allocation3]   ;;  %vm2871_vm6 = vcmask 0  }
0x1b1c   :  { %s3736_s30 = smov [#allocation4]  }
0x1b1d   :  { %s2889_s4 = sshll.u32 %s3736_s30, 4  ;;  %s2890_s4 = int_to_ptr.vmem [resolvable:$true] %s2889_s4 }
0x1b1e   :  { %s3703_s25 = scalar_lea.vmem %s2890_s4, 16  ;;  %s3707_s21 = scalar_lea.vmem %s2890_s4, 32 }
0x1b1f   :  { %p3704_p8 = scmp.ne.s32.totalorder %s2890_s4, %s3703_s25  ;;  %p3708_p9 = scmp.lt.s32.totalorder %s2890_s4, %s2890_s4 }
0x1b20   :  { %p3709_p10 = scmp.lt.s32.totalorder %s3707_s21, %s3703_s25 }
0x1b22   :  { %p3710_p11 = por %p3709_p10, %p3708_p9 }
0x1b24   :  { %p3711_p12 = pnand %p3710_p11, %p3704_p8 }
0x1ba0   :  { %v2859_v28 = vpop.xlane.xlu0 %2858 }
0x1ba1   :  { %v2860_v29 = vrot.slane %v2859_v28, 4 }
0x1ba3   :  { %v2861_v20 = vadd.f32 %v2860_v29, %v2859_v28 }
0x1ba5   :  { %v2862_v19 = vrot.slane %v2861_v20, 2 }
0x1ba7   :  { %v2863_v30 = vadd.f32 %v2862_v19, %v2861_v20 }
0x1ba9   :  { %v2864_v31 = vrot.slane %v2863_v30, 1 }
0x1bab   :  { %v2865_v32 = vadd.f32 %v2864_v31, %v2863_v30 }
0x1bad   :  { %3607 = vpush %v2865_v32 }
0x1bde   :  { %s3608_s16 = spop %3607 }
0x1bdf   :  { %v2867_v34 = vstv %s3608_s16 }
0x1be0   :  { %v2868_v35 = vsub.f32 0.0, %v2867_v34 }
0x1be2   :  { %v2870_v36 = vmul.f32 0.5, %v2868_v35 }
0x1be4   :  { %2872 = vst.msk [vmem:[#allocation4] sm:$0x1] %vm2871_vm6, %v2870_v36 }
0x1be5   :  { %3714 = shalt.err (!%p3711_p12)
}
0x1be6   :  { %s3715_s8 = scalar_lea.hbm %s4547_s22, 16 }
0x1be7   :  { %p3716_p13 = scmp.ne.s32.totalorder %s4547_s22, %s3715_s8  ;;  %p3719_p0 = scmp.lt.u32.totalorder %s3715_s8, %s4547_s22 }
0x1be9   :  { %p3721_p1 = pnand %p3719_p0, %p3716_p13 }
0x1beb   :  { %3724 = shalt.err (!%p3721_p1)
}
0x1bec   :  { %2892 = dma.vmem_to_hbm [thread:$0]  %s2890_s4, 16, %s4547_s22, [#allocation5]  }
0x1bed   :  { %3725 = dma.done.wait [#allocation3], 32  }
0x1bee   :  { %3726 = vsyncadd [#allocation3], 4294967264 }
0x1bef   :  { %3727 = dma.done.wait [#allocation5], 16  }
0x1bf0   :  { %3728 = vsyncadd [#allocation5], 4294967280 }
0x1bf1   :  { %2899 = vsyncpa [#allocation3], 1 }
0x1bf2   :  { %2900 = vsyncpa [#allocation5], 1 }

</bundles_post_ra>
